<compile_context>
chip_gen: v6e
topology: v6e:2x2x1
jax: 0.10.0
libtpu: 0.0.40
codegen_flags: <defaults>
</compile_context>

<pallas_src>
import jax
import jax.numpy as jnp
import numpy as np
from jax.experimental import pallas as pl
from jax.experimental.pallas import tpu as pltpu

# ---------------- model hyper-parameters (small, self-consistent) -----------
B = 2                  # batch
CIN = 40               # blosum channels (fixed by the module)
L_PEP, L_MHC = 15, 34  # torch.split(x, [15, 34], dim=2)
L = L_PEP + L_MHC      # 49
F = 32                 # "filters"
H = 64                 # "n_Linear"
K = 3                  # initial conv kernel size
BN_EPS = 1e-5
LEAKY_SLOPE = 0.01     # nn.LeakyReLU() default

# ---------------- fused-kernel layout constants ------------------------------
LB = 128               # per-batch lane block: conv spatial axis padded 49 -> 128
NL = B * LB            # 256: conv-matmul lane width; batch b at lanes [b*128, (b+1)*128)
K_CONV = 256           # conv contraction depth: 2 branches x (3*40 taps + shift + 7 pad)
DPAD = F * LB          # 4096: fc contraction depth; feat[b, f*128+l] = yc[f, b*128+l]
MISC_ROWS = 8          # tiny operand: fc shift | final weights + bias | mu,std per batch


# ---------------------------- fused kernel -----------------------------------
def _fused_kernel(xcol_ref, wcat_ref, fcw_ref, misc_ref, o_ref, feat_ref):
    # ---- conv + folded bias/BN(eval) + ReLU, both branches & both batch elements:
    #      ONE block-diagonal MXU matmul.  xcol pad lanes (cols 49..127 of each batch
    #      block) are all-zero, so yc is exactly 0 there after ReLU.
    yc = jnp.maximum(
        jnp.dot(wcat_ref[...], xcol_ref[...], preferred_element_type=jnp.float32),
        0.0)                                             # [F, B*128]

    # ---- flatten [F, B*128] -> [B, F*128]: all copies are 128-lane aligned (unmasked).
    #      Every element of feat is written before the fc matmul reads it, so no
    #      zero-init of the scratch is needed (stale VMEM can never be read).
    for f in range(F):
        for b in range(B):
            feat_ref[b:b + 1, f * LB:(f + 1) * LB] = yc[f:f + 1, b * LB:(b + 1) * LB]

    # ---- fc (BN scale folded into fcw) + folded bias/BN shift + LeakyReLU
    h = jnp.dot(feat_ref[...], fcw_ref[...], preferred_element_type=jnp.float32)   # [B, H]
    h = h + misc_ref[0:1, 0:H]
    h = jnp.where(h > 0, h, LEAKY_SLOPE * h)

    # ---- final linear over [h | mu | std] + bias, then sigmoid
    #      (lane-dense VPU multiply + cross-lane reduce; no tiny MXU matmul)
    wrow = misc_ref[1:2, :]                              # [1,128] = [w_h(64)|w_mu|w_std|bias|0..]
    logit = (jnp.sum(h * wrow[:, 0:H], axis=-1, keepdims=True)
             + jnp.sum(misc_ref[2:2 + B, 0:2] * wrow[:, H:H + 2], axis=-1, keepdims=True)
             + wrow[:, H + 2:H + 3])
    o_ref[...] = jax.nn.sigmoid(logit)


# ---------------------------- wrapper-side im2col -----------------------------
def _build_xcol(x):
    """Build the block-diagonal im2col operand (layout plumbing, hoisted to the wrapper).

    Returns [K_CONV, B*128] f32. Batch b occupies lanes [b*128, (b+1)*128); within a
    block, cols 0..33 are the MHC conv output positions, 34..48 the peptide positions,
    49..127 zero pad.  Rows per branch: [taps k=0..2 (3*40) | ones (shift) | 7 zero].
    """
    x = x.astype(jnp.float32)
    x_pep = x[:, :, :L_PEP]            # [B, 40, 15]
    x_mhc = x[:, :, L_PEP:]            # [B, 40, 34]

    def z(rows, cols):
        return jnp.zeros((B, rows, cols), jnp.float32)

    # MHC taps -> cols 0..33 (conv padding=1 -> tap k contributes x[:, l+k-1])
    m0 = jnp.concatenate([z(CIN, 1), x_mhc[:, :, :L_MHC - 1], z(CIN, LB - L_MHC)], axis=2)
    m1 = jnp.concatenate([x_mhc, z(CIN, LB - L_MHC)], axis=2)
    m2 = jnp.concatenate([x_mhc[:, :, 1:], z(CIN, LB - L_MHC + 1)], axis=2)
    ones_m = jnp.concatenate([jnp.ones((B, 1, L_MHC), jnp.float32), z(1, LB - L_MHC)], axis=2)
    # Peptide taps -> cols 34..48
    p0 = jnp.concatenate([z(CIN, L_MHC + 1), x_pep[:, :, :L_PEP - 1],
                          z(CIN, LB - L_MHC - L_PEP)], axis=2)
    p1 = jnp.concatenate([z(CIN, L_MHC), x_pep, z(CIN, LB - L_MHC - L_PEP)], axis=2)
    p2 = jnp.concatenate([z(CIN, L_MHC), x_pep[:, :, 1:],
                          z(CIN, LB - L_MHC - L_PEP + 1)], axis=2)
    ones_p = jnp.concatenate([z(1, L_MHC), jnp.ones((B, 1, L_PEP), jnp.float32),
                              z(1, LB - L_MHC - L_PEP)], axis=2)
    pad7 = z(7, LB)

    xcol_b = jnp.concatenate([m0, m1, m2, ones_m, pad7,
                              p0, p1, p2, ones_p, pad7], axis=1)     # [B, 256, 128]
    return jnp.transpose(xcol_b, (1, 0, 2)).reshape(K_CONV, NL)      # batch -> lane blocks


# ---------------------------- one-time weight folding -------------------------
def _fold_bn(bias, bn):
    gamma, beta, mean, var = bn
    s = gamma / jnp.sqrt(var + BN_EPS)
    t = (bias - mean) * s + beta
    return s, t


def prepare_weights(params):
    """Fold BN (eval mode) into the weights and re-layout for the kernel.  Call ONCE."""
    sm, tm = _fold_bn(params['bm'], params['bn_m'])
    sp, tp = _fold_bn(params['bp'], params['bn_p'])
    # torch conv weight [F, CIN, K] -> taps k-major along the contraction, BN scale folded
    wm_k = jnp.transpose(params['wm'], (0, 2, 1)).reshape(F, K * CIN) * sm[:, None]
    wp_k = jnp.transpose(params['wp'], (0, 2, 1)).reshape(F, K * CIN) * sp[:, None]
    zpad = jnp.zeros((F, LB - (K * CIN + 1)), jnp.float32)            # 7 zero cols
    wcat = jnp.concatenate([wm_k, tm[:, None], zpad,
                            wp_k, tp[:, None], zpad], axis=1)         # [F, 256]

    s_fc, t_fc = _fold_bn(params['fc_b'], params['bn_fc'])
    fcw3 = (params['fc_w'] * s_fc[None, :]).reshape(F, L, H)          # [F, 49, H]
    fcw3 = jnp.pad(fcw3, ((0, 0), (0, LB - L), (0, 0)))               # [F, 128, H]
    fcw = fcw3.reshape(F * LB, H)                                     # [4096, 64]

    misc = jnp.zeros((MISC_ROWS, LB), jnp.float32)
    misc = misc.at[0, 0:H].set(t_fc)                                  # fc bias + BN shift
    misc = misc.at[1, 0:H].set(params['final_w'][0:H, 0])             # final weight on h
    misc = misc.at[1, H:H + 2].set(params['final_w'][H:H + 2, 0])     # final weight on mu/std
    misc = misc.at[1, H + 2].set(params['final_b'][0])                # final bias
    return wcat, fcw, misc


# ---------------------------- forward ----------------------------------------
@jax.jit
def forward(folded, x, res_mu, res_std):
    wcat, fcw, misc_static = folded
    xcol = _build_xcol(x)
    msd = jnp.concatenate([res_mu, res_std], axis=1).astype(jnp.float32)  # [B, 2]
    misc = jax.lax.dynamic_update_slice(misc_static, msd, (2, 0))
    return pl.pallas_call(
        _fused_kernel,
        out_shape=jax.ShapeDtypeStruct((B, 1), jnp.float32),
        grid=(1,),   # single step: all operands fit in VMEM; extra steps = pure overhead
        in_specs=[
            pl.BlockSpec((K_CONV, NL), lambda i: (0, 0)),       # im2col (256 KiB)
            pl.BlockSpec((F, K_CONV), lambda i: (0, 0)),        # folded conv weights
            pl.BlockSpec((F * LB, H), lambda i: (0, 0)),        # fc weight, 4096-deep layout
            pl.BlockSpec((MISC_ROWS, LB), lambda i: (0, 0)),    # shifts / final linear / mu,std
        ],
        out_specs=pl.BlockSpec((B, 1), lambda i: (0, 0)),
        scratch_shapes=[
            pltpu.VMEM((B, F * LB), jnp.float32),               # flattened features [B, 4096]
        ],
        compiler_params=pltpu.CompilerParams(dimension_semantics=("arbitrary",)),
        # NOTE: if B ever grows, add a leading "parallel" grid axis over batch so both
        #       v7x TensorCores are used; at B=2 a single grid step is optimal.
    )(xcol, wcat, fcw, misc)


# ---------------------------- pure-JAX reference ------------------------------
def reference(params, x, res_mu, res_std):
    hp = jax.lax.Precision.HIGHEST
    x_pep, x_mhc = x[:, :, :L_PEP], x[:, :, L_PEP:]

    def conv_bn_relu(xi, w, b, bn):
        y = jax.lax.conv_general_dilated(
            xi, w, (1,), ((1, 1),), dimension_numbers=('NCH', 'OIH', 'NCH'), precision=hp)
        y = y + b[None, :, None]
        gamma, beta, mean, var = bn
        y = ((y - mean[None, :, None]) / jnp.sqrt(var[None, :, None] + BN_EPS)
             * gamma[None, :, None] + beta[None, :, None])
        return jnp.maximum(y, 0.0)

    o1 = conv_bn_relu(x_mhc, params['wm'], params['bm'], params['bn_m'])
    o2 = conv_bn_relu(x_pep, params['wp'], params['bp'], params['bn_p'])
    out = jnp.concatenate([o1, o2], axis=2).reshape(B, -1)
    h = jnp.dot(out, params['fc_w'], precision=hp) + params['fc_b']
    gamma, beta, mean, var = params['bn_fc']
    h = (h - mean) / jnp.sqrt(var + BN_EPS) * gamma + beta
    h = jnp.where(h > 0, h, LEAKY_SLOPE * h)
    cat = jnp.concatenate([h, res_mu, res_std], axis=1)
    return jax.nn.sigmoid(jnp.dot(cat, params['final_w'], precision=hp) + params['final_b'])


if __name__ == "__main__":
    key = jax.random.PRNGKey(0)
    ks = jax.random.split(key, 10)
    ones_f, zeros_f = jnp.ones((F,), jnp.float32), jnp.zeros((F,), jnp.float32)
    D = F * L
    params = {
        # Conv1d weights [out, in, k], kaiming-ish scale
        'wm': jax.random.normal(ks[0], (F, CIN, K), jnp.float32) * (2.0 / (F * K)) ** 0.5,
        'bm': jax.random.normal(ks[1], (F,), jnp.float32) * 0.05,
        'bn_m': (ones_f, zeros_f, zeros_f, ones_f),   # gamma, beta, running_mean, running_var
        'wp': jax.random.normal(ks[2], (F, CIN, K), jnp.float32) * (2.0 / (F * K)) ** 0.5,
        'bp': jax.random.normal(ks[3], (F,), jnp.float32) * 0.05,
        'bn_p': (ones_f, zeros_f, zeros_f, ones_f),
        # fc Linear stored transposed: [in, out]
        'fc_w': jax.random.normal(ks[4], (D, H), jnp.float32) * (1.0 / D) ** 0.5,
        'fc_b': jax.random.normal(ks[5], (H,), jnp.float32) * 0.05,
        'bn_fc': (jnp.ones((H,), jnp.float32), jnp.zeros((H,), jnp.float32),
                  jnp.zeros((H,), jnp.float32), jnp.ones((H,), jnp.float32)),
        'final_w': jax.random.normal(ks[6], (H + 2, 1), jnp.float32) * (1.0 / (H + 2)) ** 0.5,
        'final_b': jnp.zeros((1,), jnp.float32),
    }

    x = jax.random.normal(ks[7], (B, CIN, L), jnp.float32)
    res_mu = jax.random.normal(ks[8], (B, 1), jnp.float32)
    res_std = jax.nn.softplus(jax.random.normal(ks[9], (B, 1), jnp.float32))

    folded = jax.tree_util.tree_map(jax.block_until_ready, prepare_weights(params))

    out = forward(folded, x, res_mu, res_std)
    out = jax.block_until_ready(out)
    assert out.shape == (B, 1)

    ref = reference(params, x, res_mu, res_std)
    # All-f32 path; 20x tighter than before (small slack for MXU vs XLA-conv rounding).
    np.testing.assert_allclose(np.asarray(out), np.asarray(ref), rtol=1e-3, atol=1e-3)
    print("KERNEL_OK")
</pallas_src>

<mosaic_0001>
module attributes {stable_mosaic.version = 11 : i64} {
  func.func @_fused_kernel(%arg0: i32, %arg1: memref<256x256xf32, #tpu.memory_space<vmem>>, %arg2: memref<32x256xf32, #tpu.memory_space<vmem>>, %arg3: memref<4096x64xf32, #tpu.memory_space<vmem>>, %arg4: memref<8x128xf32, #tpu.memory_space<vmem>>, %arg5: memref<2x1xf32, #tpu.memory_space<vmem>>, %arg6: memref<2x4096xf32, #tpu.memory_space<vmem>>) attributes {dimension_semantics = [#tpu.dimension_semantics<arbitrary>], iteration_bounds = array<i64: 1>, scalar_prefetch = 0 : i64, scratch_operands = 1 : i64, tpu.core_type = #tpu.core_type<tc>, window_params = [{pipeline_mode = #tpu.pipeline_mode<synchronous>, transform_indices = @transform_0, window_bounds = array<i64: 256, 256>}, {pipeline_mode = #tpu.pipeline_mode<synchronous>, transform_indices = @transform_1, window_bounds = array<i64: 32, 256>}, {pipeline_mode = #tpu.pipeline_mode<synchronous>, transform_indices = @transform_2, window_bounds = array<i64: 4096, 64>}, {pipeline_mode = #tpu.pipeline_mode<synchronous>, transform_indices = @transform_3, window_bounds = array<i64: 8, 128>}, {pipeline_mode = #tpu.pipeline_mode<synchronous>, transform_indices = @transform_4, window_bounds = array<i64: 2, 1>}]} {
    %c0 = arith.constant 0 : index
    %c0_0 = arith.constant 0 : index
    %0 = vector.load %arg2[%c0, %c0_0] : memref<32x256xf32, #tpu.memory_space<vmem>>, vector<32x256xf32>
    %c0_1 = arith.constant 0 : index
    %c0_2 = arith.constant 0 : index
    %1 = vector.load %arg1[%c0_1, %c0_2] : memref<256x256xf32, #tpu.memory_space<vmem>>, vector<256x256xf32>
    %cst = arith.constant dense<0.000000e+00> : vector<32x256xf32>
    %2 = tpu.matmul %0, %1, %cst {dimension_numbers = #tpu.dot_dimension_numbers<[1], [0], [0], [1], [0, 0, 1, 1], [], []>} : vector<32x256xf32>, vector<256x256xf32>, vector<32x256xf32> -> vector<32x256xf32>
    %cst_3 = arith.constant 0.000000e+00 : f32
    %3 = vector.broadcast %cst_3 : f32 to vector<32x256xf32>
    %4 = arith.maximumf %2, %3 : vector<32x256xf32>
    %5 = vector.extract_strided_slice %4 {offsets = [0, 0], sizes = [1, 128], strides = [1, 1]} : vector<32x256xf32> to vector<1x128xf32>
    %c0_4 = arith.constant 0 : index
    %c0_5 = arith.constant 0 : index
    %6 = vector.load %arg6[%c0_4, %c0_5] : memref<2x4096xf32, #tpu.memory_space<vmem>>, vector<1x128xf32>
    tpu.vector_store %arg6[%c0_4, %c0_5], %5 {strides = array<i32>} : memref<2x4096xf32, #tpu.memory_space<vmem>>, vector<1x128xf32>,
    %7 = vector.extract_strided_slice %4 {offsets = [0, 128], sizes = [1, 128], strides = [1, 1]} : vector<32x256xf32> to vector<1x128xf32>
    %c1 = arith.constant 1 : index
    %c0_6 = arith.constant 0 : index
    %8 = vector.load %arg6[%c1, %c0_6] : memref<2x4096xf32, #tpu.memory_space<vmem>>, vector<1x128xf32>
    tpu.vector_store %arg6[%c1, %c0_6], %7 {strides = array<i32>} : memref<2x4096xf32, #tpu.memory_space<vmem>>, vector<1x128xf32>,
    %9 = vector.extract_strided_slice %4 {offsets = [1, 0], sizes = [1, 128], strides = [1, 1]} : vector<32x256xf32> to vector<1x128xf32>
    %c0_7 = arith.constant 0 : index
    %c128 = arith.constant 128 : index
    %10 = vector.load %arg6[%c0_7, %c128] : memref<2x4096xf32, #tpu.memory_space<vmem>>, vector<1x128xf32>
    tpu.vector_store %arg6[%c0_7, %c128], %9 {strides = array<i32>} : memref<2x4096xf32, #tpu.memory_space<vmem>>, vector<1x128xf32>,
    %11 = vector.extract_strided_slice %4 {offsets = [1, 128], sizes = [1, 128], strides = [1, 1]} : vector<32x256xf32> to vector<1x128xf32>
    %c1_8 = arith.constant 1 : index
    %c128_9 = arith.constant 128 : index
    %12 = vector.load %arg6[%c1_8, %c128_9] : memref<2x4096xf32, #tpu.memory_space<vmem>>, vector<1x128xf32>
    tpu.vector_store %arg6[%c1_8, %c128_9], %11 {strides = array<i32>} : memref<2x4096xf32, #tpu.memory_space<vmem>>, vector<1x128xf32>,
    %13 = vector.extract_strided_slice %4 {offsets = [2, 0], sizes = [1, 128], strides = [1, 1]} : vector<32x256xf32> to vector<1x128xf32>
    %c0_10 = arith.constant 0 : index
    %c256 = arith.constant 256 : index
    %14 = vector.load %arg6[%c0_10, %c256] : memref<2x4096xf32, #tpu.memory_space<vmem>>, vector<1x128xf32>
    tpu.vector_store %arg6[%c0_10, %c256], %13 {strides = array<i32>} : memref<2x4096xf32, #tpu.memory_space<vmem>>, vector<1x128xf32>,
    %15 = vector.extract_strided_slice %4 {offsets = [2, 128], sizes = [1, 128], strides = [1, 1]} : vector<32x256xf32> to vector<1x128xf32>
    %c1_11 = arith.constant 1 : index
    %c256_12 = arith.constant 256 : index
    %16 = vector.load %arg6[%c1_11, %c256_12] : memref<2x4096xf32, #tpu.memory_space<vmem>>, vector<1x128xf32>
    tpu.vector_store %arg6[%c1_11, %c256_12], %15 {strides = array<i32>} : memref<2x4096xf32, #tpu.memory_space<vmem>>, vector<1x128xf32>,
    %17 = vector.extract_strided_slice %4 {offsets = [3, 0], sizes = [1, 128], strides = [1, 1]} : vector<32x256xf32> to vector<1x128xf32>
    %c0_13 = arith.constant 0 : index
    %c384 = arith.constant 384 : index
    %18 = vector.load %arg6[%c0_13, %c384] : memref<2x4096xf32, #tpu.memory_space<vmem>>, vector<1x128xf32>
    tpu.vector_store %arg6[%c0_13, %c384], %17 {strides = array<i32>} : memref<2x4096xf32, #tpu.memory_space<vmem>>, vector<1x128xf32>,
    %19 = vector.extract_strided_slice %4 {offsets = [3, 128], sizes = [1, 128], strides = [1, 1]} : vector<32x256xf32> to vector<1x128xf32>
    %c1_14 = arith.constant 1 : index
    %c384_15 = arith.constant 384 : index
    %20 = vector.load %arg6[%c1_14, %c384_15] : memref<2x4096xf32, #tpu.memory_space<vmem>>, vector<1x128xf32>
    tpu.vector_store %arg6[%c1_14, %c384_15], %19 {strides = array<i32>} : memref<2x4096xf32, #tpu.memory_space<vmem>>, vector<1x128xf32>,
    %21 = vector.extract_strided_slice %4 {offsets = [4, 0], sizes = [1, 128], strides = [1, 1]} : vector<32x256xf32> to vector<1x128xf32>
    %c0_16 = arith.constant 0 : index
    %c512 = arith.constant 512 : index
    %22 = vector.load %arg6[%c0_16, %c512] : memref<2x4096xf32, #tpu.memory_space<vmem>>, vector<1x128xf32>
    tpu.vector_store %arg6[%c0_16, %c512], %21 {strides = array<i32>} : memref<2x4096xf32, #tpu.memory_space<vmem>>, vector<1x128xf32>,
    %23 = vector.extract_strided_slice %4 {offsets = [4, 128], sizes = [1, 128], strides = [1, 1]} : vector<32x256xf32> to vector<1x128xf32>
    %c1_17 = arith.constant 1 : index
    %c512_18 = arith.constant 512 : index
    %24 = vector.load %arg6[%c1_17, %c512_18] : memref<2x4096xf32, #tpu.memory_space<vmem>>, vector<1x128xf32>
    tpu.vector_store %arg6[%c1_17, %c512_18], %23 {strides = array<i32>} : memref<2x4096xf32, #tpu.memory_space<vmem>>, vector<1x128xf32>,
    %25 = vector.extract_strided_slice %4 {offsets = [5, 0], sizes = [1, 128], strides = [1, 1]} : vector<32x256xf32> to vector<1x128xf32>
    %c0_19 = arith.constant 0 : index
    %c640 = arith.constant 640 : index
    %26 = vector.load %arg6[%c0_19, %c640] : memref<2x4096xf32, #tpu.memory_space<vmem>>, vector<1x128xf32>
    tpu.vector_store %arg6[%c0_19, %c640], %25 {strides = array<i32>} : memref<2x4096xf32, #tpu.memory_space<vmem>>, vector<1x128xf32>,
    %27 = vector.extract_strided_slice %4 {offsets = [5, 128], sizes = [1, 128], strides = [1, 1]} : vector<32x256xf32> to vector<1x128xf32>
    %c1_20 = arith.constant 1 : index
    %c640_21 = arith.constant 640 : index
    %28 = vector.load %arg6[%c1_20, %c640_21] : memref<2x4096xf32, #tpu.memory_space<vmem>>, vector<1x128xf32>
    tpu.vector_store %arg6[%c1_20, %c640_21], %27 {strides = array<i32>} : memref<2x4096xf32, #tpu.memory_space<vmem>>, vector<1x128xf32>,
    %29 = vector.extract_strided_slice %4 {offsets = [6, 0], sizes = [1, 128], strides = [1, 1]} : vector<32x256xf32> to vector<1x128xf32>
    %c0_22 = arith.constant 0 : index
    %c768 = arith.constant 768 : index
    %30 = vector.load %arg6[%c0_22, %c768] : memref<2x4096xf32, #tpu.memory_space<vmem>>, vector<1x128xf32>
    tpu.vector_store %arg6[%c0_22, %c768], %29 {strides = array<i32>} : memref<2x4096xf32, #tpu.memory_space<vmem>>, vector<1x128xf32>,
    %31 = vector.extract_strided_slice %4 {offsets = [6, 128], sizes = [1, 128], strides = [1, 1]} : vector<32x256xf32> to vector<1x128xf32>
    %c1_23 = arith.constant 1 : index
    %c768_24 = arith.constant 768 : index
    %32 = vector.load %arg6[%c1_23, %c768_24] : memref<2x4096xf32, #tpu.memory_space<vmem>>, vector<1x128xf32>
    tpu.vector_store %arg6[%c1_23, %c768_24], %31 {strides = array<i32>} : memref<2x4096xf32, #tpu.memory_space<vmem>>, vector<1x128xf32>,
    %33 = vector.extract_strided_slice %4 {offsets = [7, 0], sizes = [1, 128], strides = [1, 1]} : vector<32x256xf32> to vector<1x128xf32>
    %c0_25 = arith.constant 0 : index
    %c896 = arith.constant 896 : index
    %34 = vector.load %arg6[%c0_25, %c896] : memref<2x4096xf32, #tpu.memory_space<vmem>>, vector<1x128xf32>
    tpu.vector_store %arg6[%c0_25, %c896], %33 {strides = array<i32>} : memref<2x4096xf32, #tpu.memory_space<vmem>>, vector<1x128xf32>,
    %35 = vector.extract_strided_slice %4 {offsets = [7, 128], sizes = [1, 128], strides = [1, 1]} : vector<32x256xf32> to vector<1x128xf32>
    %c1_26 = arith.constant 1 : index
    %c896_27 = arith.constant 896 : index
    %36 = vector.load %arg6[%c1_26, %c896_27] : memref<2x4096xf32, #tpu.memory_space<vmem>>, vector<1x128xf32>
    tpu.vector_store %arg6[%c1_26, %c896_27], %35 {strides = array<i32>} : memref<2x4096xf32, #tpu.memory_space<vmem>>, vector<1x128xf32>,
    %37 = vector.extract_strided_slice %4 {offsets = [8, 0], sizes = [1, 128], strides = [1, 1]} : vector<32x256xf32> to vector<1x128xf32>
    %c0_28 = arith.constant 0 : index
    %c1024 = arith.constant 1024 : index
    %38 = vector.load %arg6[%c0_28, %c1024] : memref<2x4096xf32, #tpu.memory_space<vmem>>, vector<1x128xf32>
    tpu.vector_store %arg6[%c0_28, %c1024], %37 {strides = array<i32>} : memref<2x4096xf32, #tpu.memory_space<vmem>>, vector<1x128xf32>,
    %39 = vector.extract_strided_slice %4 {offsets = [8, 128], sizes = [1, 128], strides = [1, 1]} : vector<32x256xf32> to vector<1x128xf32>
    %c1_29 = arith.constant 1 : index
    %c1024_30 = arith.constant 1024 : index
    %40 = vector.load %arg6[%c1_29, %c1024_30] : memref<2x4096xf32, #tpu.memory_space<vmem>>, vector<1x128xf32>
    tpu.vector_store %arg6[%c1_29, %c1024_30], %39 {strides = array<i32>} : memref<2x4096xf32, #tpu.memory_space<vmem>>, vector<1x128xf32>,
    %41 = vector.extract_strided_slice %4 {offsets = [9, 0], sizes = [1, 128], strides = [1, 1]} : vector<32x256xf32> to vector<1x128xf32>
    %c0_31 = arith.constant 0 : index
    %c1152 = arith.constant 1152 : index
    %42 = vector.load %arg6[%c0_31, %c1152] : memref<2x4096xf32, #tpu.memory_space<vmem>>, vector<1x128xf32>
    tpu.vector_store %arg6[%c0_31, %c1152], %41 {strides = array<i32>} : memref<2x4096xf32, #tpu.memory_space<vmem>>, vector<1x128xf32>,
    %43 = vector.extract_strided_slice %4 {offsets = [9, 128], sizes = [1, 128], strides = [1, 1]} : vector<32x256xf32> to vector<1x128xf32>
    %c1_32 = arith.constant 1 : index
    %c1152_33 = arith.constant 1152 : index
    %44 = vector.load %arg6[%c1_32, %c1152_33] : memref<2x4096xf32, #tpu.memory_space<vmem>>, vector<1x128xf32>
    tpu.vector_store %arg6[%c1_32, %c1152_33], %43 {strides = array<i32>} : memref<2x4096xf32, #tpu.memory_space<vmem>>, vector<1x128xf32>,
    %45 = vector.extract_strided_slice %4 {offsets = [10, 0], sizes = [1, 128], strides = [1, 1]} : vector<32x256xf32> to vector<1x128xf32>
    %c0_34 = arith.constant 0 : index
    %c1280 = arith.constant 1280 : index
    %46 = vector.load %arg6[%c0_34, %c1280] : memref<2x4096xf32, #tpu.memory_space<vmem>>, vector<1x128xf32>
    tpu.vector_store %arg6[%c0_34, %c1280], %45 {strides = array<i32>} : memref<2x4096xf32, #tpu.memory_space<vmem>>, vector<1x128xf32>,
    %47 = vector.extract_strided_slice %4 {offsets = [10, 128], sizes = [1, 128], strides = [1, 1]} : vector<32x256xf32> to vector<1x128xf32>
    %c1_35 = arith.constant 1 : index
    %c1280_36 = arith.constant 1280 : index
    %48 = vector.load %arg6[%c1_35, %c1280_36] : memref<2x4096xf32, #tpu.memory_space<vmem>>, vector<1x128xf32>
    tpu.vector_store %arg6[%c1_35, %c1280_36], %47 {strides = array<i32>} : memref<2x4096xf32, #tpu.memory_space<vmem>>, vector<1x128xf32>,
    %49 = vector.extract_strided_slice %4 {offsets = [11, 0], sizes = [1, 128], strides = [1, 1]} : vector<32x256xf32> to vector<1x128xf32>
    %c0_37 = arith.constant 0 : index
    %c1408 = arith.constant 1408 : index
    %50 = vector.load %arg6[%c0_37, %c1408] : memref<2x4096xf32, #tpu.memory_space<vmem>>, vector<1x128xf32>
    tpu.vector_store %arg6[%c0_37, %c1408], %49 {strides = array<i32>} : memref<2x4096xf32, #tpu.memory_space<vmem>>, vector<1x128xf32>,
    %51 = vector.extract_strided_slice %4 {offsets = [11, 128], sizes = [1, 128], strides = [1, 1]} : vector<32x256xf32> to vector<1x128xf32>
    %c1_38 = arith.constant 1 : index
    %c1408_39 = arith.constant 1408 : index
    %52 = vector.load %arg6[%c1_38, %c1408_39] : memref<2x4096xf32, #tpu.memory_space<vmem>>, vector<1x128xf32>
    tpu.vector_store %arg6[%c1_38, %c1408_39], %51 {strides = array<i32>} : memref<2x4096xf32, #tpu.memory_space<vmem>>, vector<1x128xf32>,
    %53 = vector.extract_strided_slice %4 {offsets = [12, 0], sizes = [1, 128], strides = [1, 1]} : vector<32x256xf32> to vector<1x128xf32>
    %c0_40 = arith.constant 0 : index
    %c1536 = arith.constant 1536 : index
    %54 = vector.load %arg6[%c0_40, %c1536] : memref<2x4096xf32, #tpu.memory_space<vmem>>, vector<1x128xf32>
    tpu.vector_store %arg6[%c0_40, %c1536], %53 {strides = array<i32>} : memref<2x4096xf32, #tpu.memory_space<vmem>>, vector<1x128xf32>,
    %55 = vector.extract_strided_slice %4 {offsets = [12, 128], sizes = [1, 128], strides = [1, 1]} : vector<32x256xf32> to vector<1x128xf32>
    %c1_41 = arith.constant 1 : index
    %c1536_42 = arith.constant 1536 : index
    %56 = vector.load %arg6[%c1_41, %c1536_42] : memref<2x4096xf32, #tpu.memory_space<vmem>>, vector<1x128xf32>
    tpu.vector_store %arg6[%c1_41, %c1536_42], %55 {strides = array<i32>} : memref<2x4096xf32, #tpu.memory_space<vmem>>, vector<1x128xf32>,
    %57 = vector.extract_strided_slice %4 {offsets = [13, 0], sizes = [1, 128], strides = [1, 1]} : vector<32x256xf32> to vector<1x128xf32>
    %c0_43 = arith.constant 0 : index
    %c1664 = arith.constant 1664 : index
    %58 = vector.load %arg6[%c0_43, %c1664] : memref<2x4096xf32, #tpu.memory_space<vmem>>, vector<1x128xf32>
    tpu.vector_store %arg6[%c0_43, %c1664], %57 {strides = array<i32>} : memref<2x4096xf32, #tpu.memory_space<vmem>>, vector<1x128xf32>,
    %59 = vector.extract_strided_slice %4 {offsets = [13, 128], sizes = [1, 128], strides = [1, 1]} : vector<32x256xf32> to vector<1x128xf32>
    %c1_44 = arith.constant 1 : index
    %c1664_45 = arith.constant 1664 : index
    %60 = vector.load %arg6[%c1_44, %c1664_45] : memref<2x4096xf32, #tpu.memory_space<vmem>>, vector<1x128xf32>
    tpu.vector_store %arg6[%c1_44, %c1664_45], %59 {strides = array<i32>} : memref<2x4096xf32, #tpu.memory_space<vmem>>, vector<1x128xf32>,
    %61 = vector.extract_strided_slice %4 {offsets = [14, 0], sizes = [1, 128], strides = [1, 1]} : vector<32x256xf32> to vector<1x128xf32>
    %c0_46 = arith.constant 0 : index
    %c1792 = arith.constant 1792 : index
    %62 = vector.load %arg6[%c0_46, %c1792] : memref<2x4096xf32, #tpu.memory_space<vmem>>, vector<1x128xf32>
    tpu.vector_store %arg6[%c0_46, %c1792], %61 {strides = array<i32>} : memref<2x4096xf32, #tpu.memory_space<vmem>>, vector<1x128xf32>,
    %63 = vector.extract_strided_slice %4 {offsets = [14, 128], sizes = [1, 128], strides = [1, 1]} : vector<32x256xf32> to vector<1x128xf32>
    %c1_47 = arith.constant 1 : index
    %c1792_48 = arith.constant 1792 : index
    %64 = vector.load %arg6[%c1_47, %c1792_48] : memref<2x4096xf32, #tpu.memory_space<vmem>>, vector<1x128xf32>
    tpu.vector_store %arg6[%c1_47, %c1792_48], %63 {strides = array<i32>} : memref<2x4096xf32, #tpu.memory_space<vmem>>, vector<1x128xf32>,
    %65 = vector.extract_strided_slice %4 {offsets = [15, 0], sizes = [1, 128], strides = [1, 1]} : vector<32x256xf32> to vector<1x128xf32>
    %c0_49 = arith.constant 0 : index
    %c1920 = arith.constant 1920 : index
    %66 = vector.load %arg6[%c0_49, %c1920] : memref<2x4096xf32, #tpu.memory_space<vmem>>, vector<1x128xf32>
    tpu.vector_store %arg6[%c0_49, %c1920], %65 {strides = array<i32>} : memref<2x4096xf32, #tpu.memory_space<vmem>>, vector<1x128xf32>,
    %67 = vector.extract_strided_slice %4 {offsets = [15, 128], sizes = [1, 128], strides = [1, 1]} : vector<32x256xf32> to vector<1x128xf32>
    %c1_50 = arith.constant 1 : index
    %c1920_51 = arith.constant 1920 : index
    %68 = vector.load %arg6[%c1_50, %c1920_51] : memref<2x4096xf32, #tpu.memory_space<vmem>>, vector<1x128xf32>
    tpu.vector_store %arg6[%c1_50, %c1920_51], %67 {strides = array<i32>} : memref<2x4096xf32, #tpu.memory_space<vmem>>, vector<1x128xf32>,
    %69 = vector.extract_strided_slice %4 {offsets = [16, 0], sizes = [1, 128], strides = [1, 1]} : vector<32x256xf32> to vector<1x128xf32>
    %c0_52 = arith.constant 0 : index
    %c2048 = arith.constant 2048 : index
    %70 = vector.load %arg6[%c0_52, %c2048] : memref<2x4096xf32, #tpu.memory_space<vmem>>, vector<1x128xf32>
    tpu.vector_store %arg6[%c0_52, %c2048], %69 {strides = array<i32>} : memref<2x4096xf32, #tpu.memory_space<vmem>>, vector<1x128xf32>,
    %71 = vector.extract_strided_slice %4 {offsets = [16, 128], sizes = [1, 128], strides = [1, 1]} : vector<32x256xf32> to vector<1x128xf32>
    %c1_53 = arith.constant 1 : index
    %c2048_54 = arith.constant 2048 : index
    %72 = vector.load %arg6[%c1_53, %c2048_54] : memref<2x4096xf32, #tpu.memory_space<vmem>>, vector<1x128xf32>
    tpu.vector_store %arg6[%c1_53, %c2048_54], %71 {strides = array<i32>} : memref<2x4096xf32, #tpu.memory_space<vmem>>, vector<1x128xf32>,
    %73 = vector.extract_strided_slice %4 {offsets = [17, 0], sizes = [1, 128], strides = [1, 1]} : vector<32x256xf32> to vector<1x128xf32>
    %c0_55 = arith.constant 0 : index
    %c2176 = arith.constant 2176 : index
    %74 = vector.load %arg6[%c0_55, %c2176] : memref<2x4096xf32, #tpu.memory_space<vmem>>, vector<1x128xf32>
    tpu.vector_store %arg6[%c0_55, %c2176], %73 {strides = array<i32>} : memref<2x4096xf32, #tpu.memory_space<vmem>>, vector<1x128xf32>,
    %75 = vector.extract_strided_slice %4 {offsets = [17, 128], sizes = [1, 128], strides = [1, 1]} : vector<32x256xf32> to vector<1x128xf32>
    %c1_56 = arith.constant 1 : index
    %c2176_57 = arith.constant 2176 : index
    %76 = vector.load %arg6[%c1_56, %c2176_57] : memref<2x4096xf32, #tpu.memory_space<vmem>>, vector<1x128xf32>
    tpu.vector_store %arg6[%c1_56, %c2176_57], %75 {strides = array<i32>} : memref<2x4096xf32, #tpu.memory_space<vmem>>, vector<1x128xf32>,
    %77 = vector.extract_strided_slice %4 {offsets = [18, 0], sizes = [1, 128], strides = [1, 1]} : vector<32x256xf32> to vector<1x128xf32>
    %c0_58 = arith.constant 0 : index
    %c2304 = arith.constant 2304 : index
    %78 = vector.load %arg6[%c0_58, %c2304] : memref<2x4096xf32, #tpu.memory_space<vmem>>, vector<1x128xf32>
    tpu.vector_store %arg6[%c0_58, %c2304], %77 {strides = array<i32>} : memref<2x4096xf32, #tpu.memory_space<vmem>>, vector<1x128xf32>,
    %79 = vector.extract_strided_slice %4 {offsets = [18, 128], sizes = [1, 128], strides = [1, 1]} : vector<32x256xf32> to vector<1x128xf32>
    %c1_59 = arith.constant 1 : index
    %c2304_60 = arith.constant 2304 : index
    %80 = vector.load %arg6[%c1_59, %c2304_60] : memref<2x4096xf32, #tpu.memory_space<vmem>>, vector<1x128xf32>
    tpu.vector_store %arg6[%c1_59, %c2304_60], %79 {strides = array<i32>} : memref<2x4096xf32, #tpu.memory_space<vmem>>, vector<1x128xf32>,
    %81 = vector.extract_strided_slice %4 {offsets = [19, 0], sizes = [1, 128], strides = [1, 1]} : vector<32x256xf32> to vector<1x128xf32>
    %c0_61 = arith.constant 0 : index
    %c2432 = arith.constant 2432 : index
    %82 = vector.load %arg6[%c0_61, %c2432] : memref<2x4096xf32, #tpu.memory_space<vmem>>, vector<1x128xf32>
    tpu.vector_store %arg6[%c0_61, %c2432], %81 {strides = array<i32>} : memref<2x4096xf32, #tpu.memory_space<vmem>>, vector<1x128xf32>,
    %83 = vector.extract_strided_slice %4 {offsets = [19, 128], sizes = [1, 128], strides = [1, 1]} : vector<32x256xf32> to vector<1x128xf32>
    %c1_62 = arith.constant 1 : index
    %c2432_63 = arith.constant 2432 : index
    %84 = vector.load %arg6[%c1_62, %c2432_63] : memref<2x4096xf32, #tpu.memory_space<vmem>>, vector<1x128xf32>
    tpu.vector_store %arg6[%c1_62, %c2432_63], %83 {strides = array<i32>} : memref<2x4096xf32, #tpu.memory_space<vmem>>, vector<1x128xf32>,
    %85 = vector.extract_strided_slice %4 {offsets = [20, 0], sizes = [1, 128], strides = [1, 1]} : vector<32x256xf32> to vector<1x128xf32>
    %c0_64 = arith.constant 0 : index
    %c2560 = arith.constant 2560 : index
    %86 = vector.load %arg6[%c0_64, %c2560] : memref<2x4096xf32, #tpu.memory_space<vmem>>, vector<1x128xf32>
    tpu.vector_store %arg6[%c0_64, %c2560], %85 {strides = array<i32>} : memref<2x4096xf32, #tpu.memory_space<vmem>>, vector<1x128xf32>,
    %87 = vector.extract_strided_slice %4 {offsets = [20, 128], sizes = [1, 128], strides = [1, 1]} : vector<32x256xf32> to vector<1x128xf32>
    %c1_65 = arith.constant 1 : index
    %c2560_66 = arith.constant 2560 : index
    %88 = vector.load %arg6[%c1_65, %c2560_66] : memref<2x4096xf32, #tpu.memory_space<vmem>>, vector<1x128xf32>
    tpu.vector_store %arg6[%c1_65, %c2560_66], %87 {strides = array<i32>} : memref<2x4096xf32, #tpu.memory_space<vmem>>, vector<1x128xf32>,
    %89 = vector.extract_strided_slice %4 {offsets = [21, 0], sizes = [1, 128], strides = [1, 1]} : vector<32x256xf32> to vector<1x128xf32>
    %c0_67 = arith.constant 0 : index
    %c2688 = arith.constant 2688 : index
    %90 = vector.load %arg6[%c0_67, %c2688] : memref<2x4096xf32, #tpu.memory_space<vmem>>, vector<1x128xf32>
    tpu.vector_store %arg6[%c0_67, %c2688], %89 {strides = array<i32>} : memref<2x4096xf32, #tpu.memory_space<vmem>>, vector<1x128xf32>,
    %91 = vector.extract_strided_slice %4 {offsets = [21, 128], sizes = [1, 128], strides = [1, 1]} : vector<32x256xf32> to vector<1x128xf32>
    %c1_68 = arith.constant 1 : index
    %c2688_69 = arith.constant 2688 : index
    %92 = vector.load %arg6[%c1_68, %c2688_69] : memref<2x4096xf32, #tpu.memory_space<vmem>>, vector<1x128xf32>
    tpu.vector_store %arg6[%c1_68, %c2688_69], %91 {strides = array<i32>} : memref<2x4096xf32, #tpu.memory_space<vmem>>, vector<1x128xf32>,
    %93 = vector.extract_strided_slice %4 {offsets = [22, 0], sizes = [1, 128], strides = [1, 1]} : vector<32x256xf32> to vector<1x128xf32>
    %c0_70 = arith.constant 0 : index
    %c2816 = arith.constant 2816 : index
    %94 = vector.load %arg6[%c0_70, %c2816] : memref<2x4096xf32, #tpu.memory_space<vmem>>, vector<1x128xf32>
    tpu.vector_store %arg6[%c0_70, %c2816], %93 {strides = array<i32>} : memref<2x4096xf32, #tpu.memory_space<vmem>>, vector<1x128xf32>,
    %95 = vector.extract_strided_slice %4 {offsets = [22, 128], sizes = [1, 128], strides = [1, 1]} : vector<32x256xf32> to vector<1x128xf32>
    %c1_71 = arith.constant 1 : index
    %c2816_72 = arith.constant 2816 : index
    %96 = vector.load %arg6[%c1_71, %c2816_72] : memref<2x4096xf32, #tpu.memory_space<vmem>>, vector<1x128xf32>
    tpu.vector_store %arg6[%c1_71, %c2816_72], %95 {strides = array<i32>} : memref<2x4096xf32, #tpu.memory_space<vmem>>, vector<1x128xf32>,
    %97 = vector.extract_strided_slice %4 {offsets = [23, 0], sizes = [1, 128], strides = [1, 1]} : vector<32x256xf32> to vector<1x128xf32>
    %c0_73 = arith.constant 0 : index
    %c2944 = arith.constant 2944 : index
    %98 = vector.load %arg6[%c0_73, %c2944] : memref<2x4096xf32, #tpu.memory_space<vmem>>, vector<1x128xf32>
    tpu.vector_store %arg6[%c0_73, %c2944], %97 {strides = array<i32>} : memref<2x4096xf32, #tpu.memory_space<vmem>>, vector<1x128xf32>,
    %99 = vector.extract_strided_slice %4 {offsets = [23, 128], sizes = [1, 128], strides = [1, 1]} : vector<32x256xf32> to vector<1x128xf32>
    %c1_74 = arith.constant 1 : index
    %c2944_75 = arith.constant 2944 : index
    %100 = vector.load %arg6[%c1_74, %c2944_75] : memref<2x4096xf32, #tpu.memory_space<vmem>>, vector<1x128xf32>
    tpu.vector_store %arg6[%c1_74, %c2944_75], %99 {strides = array<i32>} : memref<2x4096xf32, #tpu.memory_space<vmem>>, vector<1x128xf32>,
    %101 = vector.extract_strided_slice %4 {offsets = [24, 0], sizes = [1, 128], strides = [1, 1]} : vector<32x256xf32> to vector<1x128xf32>
    %c0_76 = arith.constant 0 : index
    %c3072 = arith.constant 3072 : index
    %102 = vector.load %arg6[%c0_76, %c3072] : memref<2x4096xf32, #tpu.memory_space<vmem>>, vector<1x128xf32>
    tpu.vector_store %arg6[%c0_76, %c3072], %101 {strides = array<i32>} : memref<2x4096xf32, #tpu.memory_space<vmem>>, vector<1x128xf32>,
    %103 = vector.extract_strided_slice %4 {offsets = [24, 128], sizes = [1, 128], strides = [1, 1]} : vector<32x256xf32> to vector<1x128xf32>
    %c1_77 = arith.constant 1 : index
    %c3072_78 = arith.constant 3072 : index
    %104 = vector.load %arg6[%c1_77, %c3072_78] : memref<2x4096xf32, #tpu.memory_space<vmem>>, vector<1x128xf32>
    tpu.vector_store %arg6[%c1_77, %c3072_78], %103 {strides = array<i32>} : memref<2x4096xf32, #tpu.memory_space<vmem>>, vector<1x128xf32>,
    %105 = vector.extract_strided_slice %4 {offsets = [25, 0], sizes = [1, 128], strides = [1, 1]} : vector<32x256xf32> to vector<1x128xf32>
    %c0_79 = arith.constant 0 : index
    %c3200 = arith.constant 3200 : index
    %106 = vector.load %arg6[%c0_79, %c3200] : memref<2x4096xf32, #tpu.memory_space<vmem>>, vector<1x128xf32>
    tpu.vector_store %arg6[%c0_79, %c3200], %105 {strides = array<i32>} : memref<2x4096xf32, #tpu.memory_space<vmem>>, vector<1x128xf32>,
    %107 = vector.extract_strided_slice %4 {offsets = [25, 128], sizes = [1, 128], strides = [1, 1]} : vector<32x256xf32> to vector<1x128xf32>
    %c1_80 = arith.constant 1 : index
    %c3200_81 = arith.constant 3200 : index
    %108 = vector.load %arg6[%c1_80, %c3200_81] : memref<2x4096xf32, #tpu.memory_space<vmem>>, vector<1x128xf32>
    tpu.vector_store %arg6[%c1_80, %c3200_81], %107 {strides = array<i32>} : memref<2x4096xf32, #tpu.memory_space<vmem>>, vector<1x128xf32>,
    %109 = vector.extract_strided_slice %4 {offsets = [26, 0], sizes = [1, 128], strides = [1, 1]} : vector<32x256xf32> to vector<1x128xf32>
    %c0_82 = arith.constant 0 : index
    %c3328 = arith.constant 3328 : index
    %110 = vector.load %arg6[%c0_82, %c3328] : memref<2x4096xf32, #tpu.memory_space<vmem>>, vector<1x128xf32>
    tpu.vector_store %arg6[%c0_82, %c3328], %109 {strides = array<i32>} : memref<2x4096xf32, #tpu.memory_space<vmem>>, vector<1x128xf32>,
    %111 = vector.extract_strided_slice %4 {offsets = [26, 128], sizes = [1, 128], strides = [1, 1]} : vector<32x256xf32> to vector<1x128xf32>
    %c1_83 = arith.constant 1 : index
    %c3328_84 = arith.constant 3328 : index
    %112 = vector.load %arg6[%c1_83, %c3328_84] : memref<2x4096xf32, #tpu.memory_space<vmem>>, vector<1x128xf32>
    tpu.vector_store %arg6[%c1_83, %c3328_84], %111 {strides = array<i32>} : memref<2x4096xf32, #tpu.memory_space<vmem>>, vector<1x128xf32>,
    %113 = vector.extract_strided_slice %4 {offsets = [27, 0], sizes = [1, 128], strides = [1, 1]} : vector<32x256xf32> to vector<1x128xf32>
    %c0_85 = arith.constant 0 : index
    %c3456 = arith.constant 3456 : index
    %114 = vector.load %arg6[%c0_85, %c3456] : memref<2x4096xf32, #tpu.memory_space<vmem>>, vector<1x128xf32>
    tpu.vector_store %arg6[%c0_85, %c3456], %113 {strides = array<i32>} : memref<2x4096xf32, #tpu.memory_space<vmem>>, vector<1x128xf32>,
    %115 = vector.extract_strided_slice %4 {offsets = [27, 128], sizes = [1, 128], strides = [1, 1]} : vector<32x256xf32> to vector<1x128xf32>
    %c1_86 = arith.constant 1 : index
    %c3456_87 = arith.constant 3456 : index
    %116 = vector.load %arg6[%c1_86, %c3456_87] : memref<2x4096xf32, #tpu.memory_space<vmem>>, vector<1x128xf32>
    tpu.vector_store %arg6[%c1_86, %c3456_87], %115 {strides = array<i32>} : memref<2x4096xf32, #tpu.memory_space<vmem>>, vector<1x128xf32>,
    %117 = vector.extract_strided_slice %4 {offsets = [28, 0], sizes = [1, 128], strides = [1, 1]} : vector<32x256xf32> to vector<1x128xf32>
    %c0_88 = arith.constant 0 : index
    %c3584 = arith.constant 3584 : index
    %118 = vector.load %arg6[%c0_88, %c3584] : memref<2x4096xf32, #tpu.memory_space<vmem>>, vector<1x128xf32>
    tpu.vector_store %arg6[%c0_88, %c3584], %117 {strides = array<i32>} : memref<2x4096xf32, #tpu.memory_space<vmem>>, vector<1x128xf32>,
    %119 = vector.extract_strided_slice %4 {offsets = [28, 128], sizes = [1, 128], strides = [1, 1]} : vector<32x256xf32> to vector<1x128xf32>
    %c1_89 = arith.constant 1 : index
    %c3584_90 = arith.constant 3584 : index
    %120 = vector.load %arg6[%c1_89, %c3584_90] : memref<2x4096xf32, #tpu.memory_space<vmem>>, vector<1x128xf32>
    tpu.vector_store %arg6[%c1_89, %c3584_90], %119 {strides = array<i32>} : memref<2x4096xf32, #tpu.memory_space<vmem>>, vector<1x128xf32>,
    %121 = vector.extract_strided_slice %4 {offsets = [29, 0], sizes = [1, 128], strides = [1, 1]} : vector<32x256xf32> to vector<1x128xf32>
    %c0_91 = arith.constant 0 : index
    %c3712 = arith.constant 3712 : index
    %122 = vector.load %arg6[%c0_91, %c3712] : memref<2x4096xf32, #tpu.memory_space<vmem>>, vector<1x128xf32>
    tpu.vector_store %arg6[%c0_91, %c3712], %121 {strides = array<i32>} : memref<2x4096xf32, #tpu.memory_space<vmem>>, vector<1x128xf32>,
    %123 = vector.extract_strided_slice %4 {offsets = [29, 128], sizes = [1, 128], strides = [1, 1]} : vector<32x256xf32> to vector<1x128xf32>
    %c1_92 = arith.constant 1 : index
    %c3712_93 = arith.constant 3712 : index
    %124 = vector.load %arg6[%c1_92, %c3712_93] : memref<2x4096xf32, #tpu.memory_space<vmem>>, vector<1x128xf32>
    tpu.vector_store %arg6[%c1_92, %c3712_93], %123 {strides = array<i32>} : memref<2x4096xf32, #tpu.memory_space<vmem>>, vector<1x128xf32>,
    %125 = vector.extract_strided_slice %4 {offsets = [30, 0], sizes = [1, 128], strides = [1, 1]} : vector<32x256xf32> to vector<1x128xf32>
    %c0_94 = arith.constant 0 : index
    %c3840 = arith.constant 3840 : index
    %126 = vector.load %arg6[%c0_94, %c3840] : memref<2x4096xf32, #tpu.memory_space<vmem>>, vector<1x128xf32>
    tpu.vector_store %arg6[%c0_94, %c3840], %125 {strides = array<i32>} : memref<2x4096xf32, #tpu.memory_space<vmem>>, vector<1x128xf32>,
    %127 = vector.extract_strided_slice %4 {offsets = [30, 128], sizes = [1, 128], strides = [1, 1]} : vector<32x256xf32> to vector<1x128xf32>
    %c1_95 = arith.constant 1 : index
    %c3840_96 = arith.constant 3840 : index
    %128 = vector.load %arg6[%c1_95, %c3840_96] : memref<2x4096xf32, #tpu.memory_space<vmem>>, vector<1x128xf32>
    tpu.vector_store %arg6[%c1_95, %c3840_96], %127 {strides = array<i32>} : memref<2x4096xf32, #tpu.memory_space<vmem>>, vector<1x128xf32>,
    %129 = vector.extract_strided_slice %4 {offsets = [31, 0], sizes = [1, 128], strides = [1, 1]} : vector<32x256xf32> to vector<1x128xf32>
    %c0_97 = arith.constant 0 : index
    %c3968 = arith.constant 3968 : index
    %130 = vector.load %arg6[%c0_97, %c3968] : memref<2x4096xf32, #tpu.memory_space<vmem>>, vector<1x128xf32>
    tpu.vector_store %arg6[%c0_97, %c3968], %129 {strides = array<i32>} : memref<2x4096xf32, #tpu.memory_space<vmem>>, vector<1x128xf32>,
    %131 = vector.extract_strided_slice %4 {offsets = [31, 128], sizes = [1, 128], strides = [1, 1]} : vector<32x256xf32> to vector<1x128xf32>
    %c1_98 = arith.constant 1 : index
    %c3968_99 = arith.constant 3968 : index
    %132 = vector.load %arg6[%c1_98, %c3968_99] : memref<2x4096xf32, #tpu.memory_space<vmem>>, vector<1x128xf32>
    tpu.vector_store %arg6[%c1_98, %c3968_99], %131 {strides = array<i32>} : memref<2x4096xf32, #tpu.memory_space<vmem>>, vector<1x128xf32>,
    %c0_100 = arith.constant 0 : index
    %c0_101 = arith.constant 0 : index
    %133 = vector.load %arg6[%c0_100, %c0_101] : memref<2x4096xf32, #tpu.memory_space<vmem>>, vector<2x4096xf32>
    %c0_102 = arith.constant 0 : index
    %c0_103 = arith.constant 0 : index
    %134 = vector.load %arg3[%c0_102, %c0_103] : memref<4096x64xf32, #tpu.memory_space<vmem>>, vector<4096x64xf32>
    %cst_104 = arith.constant dense<0.000000e+00> : vector<2x64xf32>
    %135 = tpu.matmul %133, %134, %cst_104 {dimension_numbers = #tpu.dot_dimension_numbers<[1], [0], [0], [1], [0, 0, 1, 1], [], []>} : vector<2x4096xf32>, vector<4096x64xf32>, vector<2x64xf32> -> vector<2x64xf32>
    %c0_105 = arith.constant 0 : index
    %c0_106 = arith.constant 0 : index
    %136 = vector.load %arg4[%c0_105, %c0_106] : memref<8x128xf32, #tpu.memory_space<vmem>>, vector<1x64xf32>
    %137 = vector.broadcast %136 : vector<1x64xf32> to vector<2x64xf32>
    %138 = arith.addf %135, %137 : vector<2x64xf32>
    %cst_107 = arith.constant 0.000000e+00 : f32
    %139 = vector.broadcast %cst_107 : f32 to vector<2x64xf32>
    %140 = arith.cmpf ogt, %138, %139 : vector<2x64xf32>
    %cst_108 = arith.constant 0.00999999977 : f32
    %141 = vector.broadcast %cst_108 : f32 to vector<2x64xf32>
    %142 = arith.mulf %141, %138 : vector<2x64xf32>
    %143 = arith.select %140, %138, %142 : vector<2x64xi1>, vector<2x64xf32>
    %c1_109 = arith.constant 1 : index
    %c0_110 = arith.constant 0 : index
    %144 = vector.load %arg4[%c1_109, %c0_110] : memref<8x128xf32, #tpu.memory_space<vmem>>, vector<1x128xf32>
    %145 = vector.extract_strided_slice %144 {offsets = [0, 0], sizes = [1, 64], strides = [1, 1]} : vector<1x128xf32> to vector<1x64xf32>
    %146 = vector.broadcast %145 : vector<1x64xf32> to vector<2x64xf32>
    %147 = arith.mulf %143, %146 : vector<2x64xf32>
    %cst_111 = arith.constant dense<0.000000e+00> : vector<2xf32>
    %148 = vector.multi_reduction <add>, %147, %cst_111 [1] : vector<2x64xf32> to vector<2xf32>
    %149 = vector.shape_cast %148 : vector<2xf32> to vector<2x1xf32>
    %c2 = arith.constant 2 : index
    %c0_112 = arith.constant 0 : index
    %150 = vector.load %arg4[%c2, %c0_112] : memref<8x128xf32, #tpu.memory_space<vmem>>, vector<2x2xf32>
    %151 = vector.extract_strided_slice %144 {offsets = [0, 64], sizes = [1, 2], strides = [1, 1]} : vector<1x128xf32> to vector<1x2xf32>
    %152 = vector.broadcast %151 : vector<1x2xf32> to vector<2x2xf32>
    %153 = arith.mulf %150, %152 : vector<2x2xf32>
    %cst_113 = arith.constant dense<0.000000e+00> : vector<2xf32>
    %154 = vector.multi_reduction <add>, %153, %cst_113 [1] : vector<2x2xf32> to vector<2xf32>
    %155 = vector.shape_cast %154 : vector<2xf32> to vector<2x1xf32>
    %156 = arith.addf %149, %155 : vector<2x1xf32>
    %157 = vector.extract_strided_slice %144 {offsets = [0, 66], sizes = [1, 1], strides = [1, 1]} : vector<1x128xf32> to vector<1x1xf32>
    %158 = vector.broadcast %157 : vector<1x1xf32> to vector<2x1xf32>
    %159 = arith.addf %156, %158 : vector<2x1xf32>
    %160 = arith.negf %159 : vector<2x1xf32>
    %161 = math.exp %160 : vector<2x1xf32>
    %cst_114 = arith.constant 1.000000e+00 : f32
    %162 = vector.broadcast %cst_114 : f32 to vector<2x1xf32>
    %163 = arith.addf %162, %161 : vector<2x1xf32>
    %164 = arith.divf %162, %163 : vector<2x1xf32>
    %c0_115 = arith.constant 0 : index
    %c0_116 = arith.constant 0 : index
    %165 = vector.load %arg5[%c0_115, %c0_116] : memref<2x1xf32, #tpu.memory_space<vmem>>, vector<2x1xf32>
    tpu.vector_store %arg5[%c0_115, %c0_116], %164 {strides = array<i32>} : memref<2x1xf32, #tpu.memory_space<vmem>>, vector<2x1xf32>,
    return
  }
  func.func @transform_0(%arg0: i32) -> (i32, i32) {
    %c0_i32 = arith.constant 0 : i32
    %c0_i32_0 = arith.constant 0 : i32
    %c0_i32_1 = arith.constant 0 : i32
    return %c0_i32, %c0_i32_0 : i32, i32
  }
  func.func @transform_1(%arg0: i32) -> (i32, i32) {
    %c0_i32 = arith.constant 0 : i32
    %c0_i32_0 = arith.constant 0 : i32
    %c0_i32_1 = arith.constant 0 : i32
    return %c0_i32, %c0_i32_0 : i32, i32
  }
  func.func @transform_2(%arg0: i32) -> (i32, i32) {
    %c0_i32 = arith.constant 0 : i32
    %c0_i32_0 = arith.constant 0 : i32
    %c0_i32_1 = arith.constant 0 : i32
    return %c0_i32, %c0_i32_0 : i32, i32
  }
  func.func @transform_3(%arg0: i32) -> (i32, i32) {
    %c0_i32 = arith.constant 0 : i32
    %c0_i32_0 = arith.constant 0 : i32
    %c0_i32_1 = arith.constant 0 : i32
    return %c0_i32, %c0_i32_0 : i32, i32
  }
  func.func @transform_4(%arg0: i32) -> (i32, i32) {
    %c0_i32 = arith.constant 0 : i32
    %c0_i32_0 = arith.constant 0 : i32
    %c0_i32_1 = arith.constant 0 : i32
    return %c0_i32, %c0_i32_0 : i32, i32
  }
}

</mosaic_0001>

<bundles_post_ra>
// kernel: forward.1
= control target key start
LH: loop header
LB: loop body
LE: loop exit
PB: predicated region body
PF: predicated region fallthrough
CT: control target
= control target key end

     0   :  { %s2992_s30 = smov 64   ;;  %vm2354_vm0 = vcmask 9216   ;;  %vm2344_vm2 = vcmask 517120   ;;  %vm2370_vm3 = vcmask 1024   ;;  %s4897_s0 = inlined_call_operand.vmem [shape: f32[256,256], index: 0, kind: input, shape index: {}]   ;;  %s4898_s1 = inlined_call_operand.vmem [shape: f32[32,256], index: 1, kind: input, shape index: {}]   ;;  %s4899_s2 = inlined_call_operand.vmem [shape: f32[4096,64], index: 2, kind: input, shape index: {}]   ;;  %s4900_s3 = inlined_call_operand.vmem [shape: f32[8,128], index: 3, kind: input, shape index: {}]   ;;  %s4901_s4 = inlined_call_operand.vmem [shape: f32[2,1], index: 4, kind: output, shape index: {}]  }
   0x1   :  { %v56_v0 = vld [vmem:[%s4897_s0 + $0xf8] sm:$0xff]  ;;  %v55_v1 = vld [vmem:[%s4897_s0 + $0xf0] sm:$0xff]  ;;  %v54_v2 = vld [vmem:[%s4897_s0 + $0xe8] sm:$0xff] }
   0x2   :  { %89 = vmatprep.subr.mxu0 %v56_v0  ;;  %v53_v3 = vld [vmem:[%s4897_s0 + $0xe0] sm:$0xff]  ;;  %v52_v4 = vld [vmem:[%s4897_s0 + $0xd8] sm:$0xff]  ;;  %v51_v5 = vld [vmem:[%s4897_s0 + $0xd0] sm:$0xff] }
   0x3   :  { %90 = vmatpush1.msra.mxu0 %v55_v1  ;;  %v50_v6 = vld [vmem:[%s4897_s0 + $0xc8] sm:$0xff]  ;;  %v49_v7 = vld [vmem:[%s4897_s0 + $0xc0] sm:$0xff]  ;;  %v48_v8 = vld [vmem:[%s4897_s0 + $0xb8] sm:$0xff] }
   0x4   :  { %91 = vmatprep.subr.mxu0 %v54_v2  ;;  %v47_v9 = vld [vmem:[%s4897_s0 + $0xb0] sm:$0xff]  ;;  %v46_v10 = vld [vmem:[%s4897_s0 + $0xa8] sm:$0xff]  ;;  %v45_v11 = vld [vmem:[%s4897_s0 + $0xa0] sm:$0xff] }
   0x5   :  { %92 = vmatpush1.msra.mxu0 %v53_v3  ;;  %v44_v12 = vld [vmem:[%s4897_s0 + $0x98] sm:$0xff]  ;;  %v43_v13 = vld [vmem:[%s4897_s0 + $0x90] sm:$0xff]  ;;  %v42_v14 = vld [vmem:[%s4897_s0 + $0x88] sm:$0xff] }
   0x6   :  { %93 = vmatprep.subr.mxu0 %v52_v4  ;;  %v41_v15 = vld [vmem:[%s4897_s0 + $0x80] sm:$0xff]  ;;  %v40_v16 = vld [vmem:[%s4897_s0 + $0x78] sm:$0xff]  ;;  %v39_v17 = vld [vmem:[%s4897_s0 + $0x70] sm:$0xff] }
   0x7   :  { %94 = vmatpush1.msra.mxu0 %v51_v5  ;;  %v38_v18 = vld [vmem:[%s4897_s0 + $0x68] sm:$0xff]  ;;  %v37_v19 = vld [vmem:[%s4897_s0 + $0x60] sm:$0xff]  ;;  %v36_v20 = vld [vmem:[%s4897_s0 + $0x58] sm:$0xff] }
   0x8   :  { %95 = vmatprep.subr.mxu0 %v50_v6  ;;  %v35_v21 = vld [vmem:[%s4897_s0 + $0x50] sm:$0xff]  ;;  %v34_v22 = vld [vmem:[%s4897_s0 + $0x48] sm:$0xff]  ;;  %v33_v23 = vld [vmem:[%s4897_s0 + $0x40] sm:$0xff] }
   0x9   :  { %96 = vmatpush1.msra.mxu0 %v49_v7  ;;  %v18_v24 = vld [vmem:[%s4898_s1 + $0x8] sm:$0xff]  ;;  %v32_v25 = vld [vmem:[%s4897_s0 + $0x38] sm:$0xff]  ;;  %v31_v26 = vld [vmem:[%s4897_s0 + $0x30] sm:$0xff] }
   0xa   :  { %97 = vmatprep.subr.mxu0 %v48_v8  ;;  %153 = vmatprep.mubr.f32.mxu0 %v18_v24  ;;  %v30_v27 = vld [vmem:[%s4897_s0 + $0x28] sm:$0xff]  ;;  %v553_v28 = vld [vmem:[%s4899_s2 + $0xf8] sm:$0xff]  ;;  %v552_v30 = vld [vmem:[%s4899_s2 + $0xf0] sm:$0xff] }
   0xb   :  { %98 = vmatpush1.msra.mxu0 %v47_v9  ;;  %v537_v29 = vld [vmem:[%s4899_s2 + $0x78] sm:$0xff]  ;;  %v29_v31 = vld [vmem:[%s4897_s0 + $0x20] sm:$0xff]  ;;  %2419 = vmatprep.subr.mxu1 %v553_v28  ;;  %v536_v32 = vld [vmem:[%s4899_s2 + $0x70] sm:$0xff] }
   0xc   :  { %99 = vmatprep.subr.mxu0 %v46_v10  ;;  %v28_v33 = vld [vmem:[%s4897_s0 + $0x18] sm:$0xff]  ;;  %2420 = vmatpush3.msra.mxu1 %v537_v29  ;;  %v551_v34 = vld [vmem:[%s4899_s2 + $0xe8] sm:$0xff]  ;;  %v27_v35 = vld [vmem:[%s4897_s0 + $0x10] sm:$0xff] }
   0xd   :  { %100 = vmatpush1.msra.mxu0 %v45_v11  ;;  %2421 = vmatprep.subr.mxu1 %v552_v30  ;;  %v535_v36 = vld [vmem:[%s4899_s2 + $0x68] sm:$0xff]  ;;  %v550_v38 = vld [vmem:[%s4899_s2 + $0xe0] sm:$0xff]  ;;  %v88_v41 = vld [vmem:[%s4897_s0 + $0x1f8] sm:$0xff] }
   0xe   :  { %101 = vmatprep.subr.mxu0 %v44_v12  ;;  %v26_v37 = vld [vmem:[%s4897_s0 + $0x8] sm:$0xff]  ;;  %2422 = vmatpush3.msra.mxu1 %v536_v32  ;;  %v25_v39 = vld [vmem:[%s4897_s0] sm:$0xff]  ;;  %v549_v42 = vld [vmem:[%s4899_s2 + $0xd8] sm:$0xff] }
   0xf   :  { %102 = vmatpush1.msra.mxu0 %v43_v13  ;;  %2423 = vmatprep.subr.mxu1 %v551_v34  ;;  %v534_v40 = vld [vmem:[%s4899_s2 + $0x60] sm:$0xff]  ;;  %v87_v43 = vld [vmem:[%s4897_s0 + $0x1f0] sm:$0xff]  ;;  %v86_v44 = vld [vmem:[%s4897_s0 + $0x1e8] sm:$0xff] }
  0x10   :  { %103 = vmatprep.subr.mxu0 %v42_v14  ;;  %2424 = vmatpush3.msra.mxu1 %v535_v36  ;;  %v85_v45 = vld [vmem:[%s4897_s0 + $0x1e0] sm:$0xff]  ;;  %v84_v46 = vld [vmem:[%s4897_s0 + $0x1d8] sm:$0xff]  ;;  %v83_v47 = vld [vmem:[%s4897_s0 + $0x1d0] sm:$0xff] }
  0x11   :  { %104 = vmatpush1.msra.mxu0 %v41_v15  ;;  %2425 = vmatprep.subr.mxu1 %v550_v38  ;;  %v82_v48 = vld [vmem:[%s4897_s0 + $0x1c8] sm:$0xff]  ;;  %v81_v49 = vld [vmem:[%s4897_s0 + $0x1c0] sm:$0xff]  ;;  %v80_v50 = vld [vmem:[%s4897_s0 + $0x1b8] sm:$0xff] }
  0x12   :  { %105 = vmatprep.subr.mxu0 %v40_v16  ;;  %2426 = vmatpush3.msra.mxu1 %v534_v40  ;;  %v79_v51 = vld [vmem:[%s4897_s0 + $0x1b0] sm:$0xff]  ;;  %v78_v52 = vld [vmem:[%s4897_s0 + $0x1a8] sm:$0xff]  ;;  %v77_v53 = vld [vmem:[%s4897_s0 + $0x1a0] sm:$0xff] }
  0x13   :  { %106 = vmatpush1.msra.mxu0 %v39_v17  ;;  %2427 = vmatprep.subr.mxu1 %v549_v42  ;;  %v76_v54 = vld [vmem:[%s4897_s0 + $0x198] sm:$0xff]  ;;  %v75_v55 = vld [vmem:[%s4897_s0 + $0x190] sm:$0xff]  ;;  %v74_v56 = vld [vmem:[%s4897_s0 + $0x188] sm:$0xff] }
  0x14   :  { %107 = vmatprep.subr.mxu0 %v38_v18  ;;  %v73_v57 = vld [vmem:[%s4897_s0 + $0x180] sm:$0xff]  ;;  %v72_v58 = vld [vmem:[%s4897_s0 + $0x178] sm:$0xff]  ;;  %v71_v59 = vld [vmem:[%s4897_s0 + $0x170] sm:$0xff] }
  0x15   :  { %108 = vmatpush1.msra.mxu0 %v37_v19  ;;  %v70_v60 = vld [vmem:[%s4897_s0 + $0x168] sm:$0xff]  ;;  %v69_v61 = vld [vmem:[%s4897_s0 + $0x160] sm:$0xff]  ;;  %v68_v62 = vld [vmem:[%s4897_s0 + $0x158] sm:$0xff] }
  0x16   :  { %109 = vmatprep.subr.mxu0 %v36_v20  ;;  %v67_v63 = vld [vmem:[%s4897_s0 + $0x150] sm:$0xff]  ;;  %v66_v0 = vld [vmem:[%s4897_s0 + $0x148] sm:$0xff]  ;;  %v65_v1 = vld [vmem:[%s4897_s0 + $0x140] sm:$0xff] }
  0x17   :  { %110 = vmatpush1.msra.mxu0 %v35_v21  ;;  %v64_v2 = vld [vmem:[%s4897_s0 + $0x138] sm:$0xff]  ;;  %v63_v3 = vld [vmem:[%s4897_s0 + $0x130] sm:$0xff]  ;;  %v62_v4 = vld [vmem:[%s4897_s0 + $0x128] sm:$0xff] }
  0x18   :  { %111 = vmatprep.subr.mxu0 %v34_v22  ;;  %v61_v5 = vld [vmem:[%s4897_s0 + $0x120] sm:$0xff]  ;;  %v60_v6 = vld [vmem:[%s4897_s0 + $0x118] sm:$0xff]  ;;  %v59_v7 = vld [vmem:[%s4897_s0 + $0x110] sm:$0xff] }
  0x19   :  { %112 = vmatpush1.msra.mxu0 %v33_v23  ;;  %v58_v8 = vld [vmem:[%s4897_s0 + $0x108] sm:$0xff]  ;;  %v57_v9 = vld [vmem:[%s4897_s0 + $0x100] sm:$0xff]  ;;  %v617_v11 = vld [vmem:[%s4899_s2 + $0x2f8] sm:$0xff] }
  0x1a   :  { %113 = vmatprep.subr.mxu0 %v32_v25  ;;  %v17_v10 = vld [vmem:[%s4898_s1] sm:$0xff]  ;;  %v20_v12 = vld [vmem:[%s4898_s1 + $0x18] sm:$0xff]  ;;  %v616_v14 = vld [vmem:[%s4899_s2 + $0x2f0] sm:$0xff] }
  0x1b   :  { %114 = vmatpush1.msra.mxu0 %v31_v26  ;;  %v601_v13 = vld [vmem:[%s4899_s2 + $0x278] sm:$0xff]  ;;  %v600_v15 = vld [vmem:[%s4899_s2 + $0x270] sm:$0xff]  ;;  %v615_v17 = vld [vmem:[%s4899_s2 + $0x2e8] sm:$0xff] }
  0x1c   :  { %115 = vmatprep.subr.mxu0 %v30_v27  ;;  %v19_v16 = vld [vmem:[%s4898_s1 + $0x10] sm:$0xff]  ;;  %v22_v18 = vld [vmem:[%s4898_s1 + $0x28] sm:$0xff]  ;;  %v21_v20 = vld [vmem:[%s4898_s1 + $0x20] sm:$0xff] }
  0x1d   :  { %116 = vmatpush1.msra.mxu0 %v29_v31  ;;  %v599_v19 = vld [vmem:[%s4899_s2 + $0x268] sm:$0xff]  ;;  %v24_v21 = vld [vmem:[%s4898_s1 + $0x38] sm:$0xff]  ;;  %v23_v22 = vld [vmem:[%s4898_s1 + $0x30] sm:$0xff] }
  0x1e   :  { %117 = vmatprep.subr.mxu0 %v28_v33  ;;  %v533_v23 = vld [vmem:[%s4899_s2 + $0x58] sm:$0xff]  ;;  %v614_v24 = vld [vmem:[%s4899_s2 + $0x2e0] sm:$0xff]  ;;  %v548_v25 = vld [vmem:[%s4899_s2 + $0xd0] sm:$0xff] }
  0x1f   :  { %118 = vmatpush1.msra.mxu0 %v27_v35  ;;  %2428 = vmatpush3.msra.mxu1 %v533_v23  ;;  %v598_v26 = vld [vmem:[%s4899_s2 + $0x260] sm:$0xff]  ;;  %v532_v27 = vld [vmem:[%s4899_s2 + $0x50] sm:$0xff]  ;;  %v613_v28 = vld [vmem:[%s4899_s2 + $0x2d8] sm:$0xff] }
  0x20   :  { %119 = vmatprep.subr.mxu0 %v26_v37  ;;  %2429 = vmatprep.subr.mxu1 %v548_v25  ;;  %v547_v29 = vld [vmem:[%s4899_s2 + $0xc8] sm:$0xff]  ;;  %v597_v30 = vld [vmem:[%s4899_s2 + $0x258] sm:$0xff]  ;;  %v612_v32 = vld [vmem:[%s4899_s2 + $0x2d0] sm:$0xff] }
  0x21   :  { %120 = vmatpush1.msra.mxu0 %v25_v39  ;;  %2430 = vmatpush3.msra.mxu1 %v532_v27  ;;  %v531_v31 = vld [vmem:[%s4899_s2 + $0x48] sm:$0xff]  ;;  %v546_v33 = vld [vmem:[%s4899_s2 + $0xc0] sm:$0xff]  ;;  %v596_v34 = vld [vmem:[%s4899_s2 + $0x250] sm:$0xff] }
  0x22   :  { %121 = vmatprep.subr.mxu0 %v88_v41  ;;  %2431 = vmatprep.subr.mxu1 %v547_v29  ;;  %v530_v35 = vld [vmem:[%s4899_s2 + $0x40] sm:$0xff]  ;;  %v611_v36 = vld [vmem:[%s4899_s2 + $0x2c8] sm:$0xff]  ;;  %v545_v37 = vld [vmem:[%s4899_s2 + $0xb8] sm:$0xff] }
  0x23   :  { %122 = vmatpush2.msra.mxu0 %v87_v43  ;;  %2432 = vmatpush3.msra.mxu1 %v531_v31  ;;  %v595_v38 = vld [vmem:[%s4899_s2 + $0x248] sm:$0xff]  ;;  %v529_v39 = vld [vmem:[%s4899_s2 + $0x38] sm:$0xff]  ;;  %v610_v40 = vld [vmem:[%s4899_s2 + $0x2c0] sm:$0xff] }
  0x24   :  { %123 = vmatprep.subr.mxu0 %v86_v44  ;;  %2433 = vmatprep.subr.mxu1 %v546_v33  ;;  %v544_v41 = vld [vmem:[%s4899_s2 + $0xb0] sm:$0xff]  ;;  %v594_v42 = vld [vmem:[%s4899_s2 + $0x240] sm:$0xff]  ;;  %v609_v44 = vld [vmem:[%s4899_s2 + $0x2b8] sm:$0xff] }
  0x25   :  { %124 = vmatpush2.msra.mxu0 %v85_v45  ;;  %2434 = vmatpush3.msra.mxu1 %v530_v35  ;;  %v528_v43 = vld [vmem:[%s4899_s2 + $0x30] sm:$0xff]  ;;  %v543_v45 = vld [vmem:[%s4899_s2 + $0xa8] sm:$0xff] }
  0x26   :  { %125 = vmatprep.subr.mxu0 %v84_v46  ;;  %2435 = vmatprep.subr.mxu1 %v545_v37  ;;  %v593_v46 = vld [vmem:[%s4899_s2 + $0x238] sm:$0xff] }
  0x27   :  { %126 = vmatpush2.msra.mxu0 %v83_v47  ;;  %2436 = vmatpush3.msra.mxu1 %v529_v39  ;;  %v527_v47 = vld [vmem:[%s4899_s2 + $0x28] sm:$0xff] }
  0x28   :  { %127 = vmatprep.subr.mxu0 %v82_v48  ;;  %2437 = vmatprep.subr.mxu1 %v544_v41  ;;  %v608_v48 = vld [vmem:[%s4899_s2 + $0x2b0] sm:$0xff] }
  0x29   :  { %128 = vmatpush2.msra.mxu0 %v81_v49  ;;  %2438 = vmatpush3.msra.mxu1 %v528_v43  ;;  %v542_v49 = vld [vmem:[%s4899_s2 + $0xa0] sm:$0xff] }
  0x2a   :  { %129 = vmatprep.subr.mxu0 %v80_v50  ;;  %2439 = vmatprep.subr.mxu1 %v543_v45  ;;  %v592_v50 = vld [vmem:[%s4899_s2 + $0x230] sm:$0xff] }
  0x2b   :  { %130 = vmatpush2.msra.mxu0 %v79_v51  ;;  %2440 = vmatpush3.msra.mxu1 %v527_v47  ;;  %v526_v51 = vld [vmem:[%s4899_s2 + $0x20] sm:$0xff] }
  0x2c   :  { %131 = vmatprep.subr.mxu0 %v78_v52  ;;  %2441 = vmatprep.subr.mxu1 %v542_v49  ;;  %v607_v52 = vld [vmem:[%s4899_s2 + $0x2a8] sm:$0xff] }
  0x2d   :  { %132 = vmatpush2.msra.mxu0 %v77_v53  ;;  %v541_v53 = vld [vmem:[%s4899_s2 + $0x98] sm:$0xff]  ;;  %2442 = vmatpush3.msra.mxu1 %v526_v51 }
  0x2e   :  { %133 = vmatprep.subr.mxu0 %v76_v54  ;;  %v591_v54 = vld [vmem:[%s4899_s2 + $0x228] sm:$0xff]  ;;  %2443 = vmatprep.subr.mxu1 %v541_v53 }
  0x2f   :  { %134 = vmatpush2.msra.mxu0 %v75_v55  ;;  %v525_v55 = vld [vmem:[%s4899_s2 + $0x18] sm:$0xff] }
  0x30   :  { %135 = vmatprep.subr.mxu0 %v74_v56  ;;  %v606_v56 = vld [vmem:[%s4899_s2 + $0x2a0] sm:$0xff]  ;;  %2444 = vmatpush3.msra.mxu1 %v525_v55 }
  0x31   :  { %136 = vmatpush2.msra.mxu0 %v73_v57  ;;  %v540_v57 = vld [vmem:[%s4899_s2 + $0x90] sm:$0xff] }
  0x32   :  { %137 = vmatprep.subr.mxu0 %v72_v58  ;;  %v590_v58 = vld [vmem:[%s4899_s2 + $0x220] sm:$0xff]  ;;  %2445 = vmatprep.subr.mxu1 %v540_v57 }
  0x33   :  { %138 = vmatpush2.msra.mxu0 %v71_v59  ;;  %v524_v59 = vld [vmem:[%s4899_s2 + $0x10] sm:$0xff] }
  0x34   :  { %139 = vmatprep.subr.mxu0 %v70_v60  ;;  %v605_v60 = vld [vmem:[%s4899_s2 + $0x298] sm:$0xff]  ;;  %2446 = vmatpush3.msra.mxu1 %v524_v59 }
  0x35   :  { %140 = vmatpush2.msra.mxu0 %v69_v61  ;;  %v539_v61 = vld [vmem:[%s4899_s2 + $0x88] sm:$0xff] }
  0x36   :  { %141 = vmatprep.subr.mxu0 %v68_v62  ;;  %v589_v62 = vld [vmem:[%s4899_s2 + $0x218] sm:$0xff]  ;;  %2447 = vmatprep.subr.mxu1 %v539_v61 }
  0x37   :  { %142 = vmatpush2.msra.mxu0 %v67_v63  ;;  %v523_v63 = vld [vmem:[%s4899_s2 + $0x8] sm:$0xff] }
  0x38   :  { %143 = vmatprep.subr.mxu0 %v66_v0  ;;  %v604_v0 = vld [vmem:[%s4899_s2 + $0x290] sm:$0xff]  ;;  %2448 = vmatpush3.msra.mxu1 %v523_v63 }
  0x39   :  { %144 = vmatpush2.msra.mxu0 %v65_v1  ;;  %v538_v1 = vld [vmem:[%s4899_s2 + $0x80] sm:$0xff] }
  0x3a   :  { %145 = vmatprep.subr.mxu0 %v64_v2  ;;  %v588_v2 = vld [vmem:[%s4899_s2 + $0x210] sm:$0xff]  ;;  %2449 = vmatprep.subr.mxu1 %v538_v1 }
  0x3b   :  { %146 = vmatpush2.msra.mxu0 %v63_v3  ;;  %v522_v3 = vld [vmem:[%s4899_s2] sm:$0xff] }
  0x3c   :  { %147 = vmatprep.subr.mxu0 %v62_v4  ;;  %v603_v4 = vld [vmem:[%s4899_s2 + $0x288] sm:$0xff]  ;;  %2450 = vmatpush3.msra.mxu1 %v522_v3 }
  0x3d   :  { %148 = vmatpush2.msra.mxu0 %v61_v5  ;;  %v585_v5 = vld [vmem:[%s4899_s2 + $0x1f8] sm:$0xff] }
  0x3e   :  { %149 = vmatprep.subr.mxu0 %v60_v6  ;;  %v587_v6 = vld [vmem:[%s4899_s2 + $0x208] sm:$0xff]  ;;  %2454 = vmatprep.subr.mxu1 %v585_v5 }
  0x3f   :  { %150 = vmatpush2.msra.mxu0 %v59_v7  ;;  %v602_v7 = vld [vmem:[%s4899_s2 + $0x280] sm:$0xff] }
  0x40   :  { %151 = vmatprep.subr.mxu0 %v58_v8  ;;  %v586_v8 = vld [vmem:[%s4899_s2 + $0x200] sm:$0xff] }
  0x41   :  { %152 = vmatpush2.msra.mxu0 %v57_v9  ;;  %v681_v9 = vld [vmem:[%s4899_s2 + $0x4f8] sm:$0xff] }
  0x42   :  { %154 = vmatmul.mubr.f32.vlgmr.msra.gmra.mxu0 %v17_v10  ;;  %2489 = vmatprep.subr.mxu0 %v617_v11  ;;  %v2991_v10 = vmov 1983009808  }
  0x43   :  { %159 = vmatprep.mubr.f32.mxu0 %v20_v12  ;;  %2490 = vmatpush3.msra.mxu0 %v601_v13  ;;  %v190_v11 = vunpack.c.l.s4 %v2991_v10  ;;  %v192_v12 = vlaneseq }
  0x44   :  { %2491 = vmatprep.subr.mxu0 %v616_v14 }
  0x45   :  { %2492 = vmatpush3.msra.mxu0 %v600_v15  ;;  %v191_v13 = vunpack.c.0.s8 %v190_v11  ;;  %v193_v14 = vshrl.u32 %v192_v12, 7 }
  0x46   :  { %160 = vmatmul.mubr.f32.gmra.mxu0 %v19_v16  ;;  %2493 = vmatprep.subr.mxu0 %v615_v17 }
  0x47   :  { %165 = vmatprep.mubr.f32.mxu0 %v22_v18  ;;  %2494 = vmatpush3.msra.mxu0 %v599_v19  ;;  %v3433_v15 = vsub.s32 %v191_v13, %v193_v14 }
  0x48   :  { %2495 = vmatprep.subr.mxu0 %v614_v24 }
  0x49   :  { %2496 = vmatpush3.msra.mxu0 %v598_v26 }
  0x4a   :  { %166 = vmatmul.mubr.f32.gmra.mxu0 %v21_v20  ;;  %2497 = vmatprep.subr.mxu0 %v613_v28 }
  0x4b   :  { %171 = vmatprep.mubr.f32.mxu0 %v24_v21  ;;  %2498 = vmatpush3.msra.mxu0 %v597_v30 }
  0x4c   :  { %2499 = vmatprep.subr.mxu0 %v612_v32 }
  0x4d   :  { %2500 = vmatpush3.msra.mxu0 %v596_v34 }
  0x4e   :  { %172 = vmatmul.mubr.f32.gmra.mxu0 %v23_v22  ;;  %2501 = vmatprep.subr.mxu0 %v611_v36 }
  0x4f   :  { %2502 = vmatpush3.msra.mxu0 %v595_v38 }
  0x50   :  { %2503 = vmatprep.subr.mxu0 %v610_v40 }
  0x51   :  { %2504 = vmatpush3.msra.mxu0 %v594_v42 }
  0x52   :  { %2505 = vmatprep.subr.mxu0 %v609_v44 }
  0x53   :  { %2506 = vmatpush3.msra.mxu0 %v593_v46 }
  0x54   :  { %2507 = vmatprep.subr.mxu0 %v608_v48 }
  0x55   :  { %2508 = vmatpush3.msra.mxu0 %v592_v50 }
  0x56   :  { %2509 = vmatprep.subr.mxu0 %v607_v52 }
  0x57   :  { %2510 = vmatpush3.msra.mxu0 %v591_v54 }
  0x58   :  { %2511 = vmatprep.subr.mxu0 %v606_v56 }
  0x59   :  { %2512 = vmatpush3.msra.mxu0 %v590_v58 }
  0x5a   :  { %2513 = vmatprep.subr.mxu0 %v605_v60 }
  0x5b   :  { %2514 = vmatpush3.msra.mxu0 %v589_v62 }
  0x5c   :  { %2515 = vmatprep.subr.mxu0 %v604_v0 }
  0x5d   :  { %2516 = vmatpush3.msra.mxu0 %v588_v2 }
  0x5e   :  { %2517 = vmatprep.subr.mxu0 %v603_v4 }
  0x5f   :  { %2518 = vmatpush3.msra.mxu0 %v587_v6 }
  0x60   :  { %2519 = vmatprep.subr.mxu0 %v602_v7 }
  0x61   :  { %2520 = vmatpush3.msra.mxu0 %v586_v8 }
  0x62   :  { %2559 = vmatprep.subr.mxu0 %v681_v9 }
 0x102   :  { %v155_v16 = vpop.f32.mrf.mxu0 }
 0x103   :  { %v178_v17 = vmax.f32 %v155_v16, 0.0 }
 0x104   :  { %v157_v18 = vpop.f32.mrf.mxu0 }
 0x105   :  { %186 = vst [vmem:[#allocation2] sm:$0x1] %v178_v17  ;;  %v195_v19 = vrot.slane %v178_v17, %v3433_v15  ;;  %v226_v20 = vcombine.high %v178_v17, %v178_v17  ;;  %v179_v21 = vmax.f32 %v157_v18, 0.0 }
 0x106   :  { %v161_v22 = vpop.f32.mrf.mxu0 }
 0x107   :  { %v2376_v23 = vrot.slane %v195_v19, 9  ;;  %v212_v24 = vcombine.high %v195_v19, %v195_v19  ;;  %v233_v25 = vrot.slane %v226_v20, %v3433_v15  ;;  %2380 = vst.sshfl [vmem:[#allocation2 + $0x8] sm:$0x1 pattern:$0x76325410] %v226_v20  ;;  %v207_v26 = vrot.slane %v179_v21, %v3433_v15 }
 0x108   :  { %187 = vst [vmem:[#allocation2 + $0x1] sm:$0x1] %v179_v21  ;;  %v236_v27 = vcombine.high %v179_v21, %v179_v21  ;;  %v180_v28 = vmax.f32 %v161_v22, 0.0  ;;  %v163_v29 = vpop.f32.mrf.mxu0 }
 0x109   :  { %199 = vst [vmem:[#allocation2 + $0x2] sm:$0x1] %v2376_v23  ;;  %214 = vst [vmem:[#allocation2 + $0x4] sm:$0x1] %v212_v24  ;;  %v2378_v30 = vrot.slane %v212_v24, 9  ;;  %v2382_v31 = vrot.slane %v233_v25, 9  ;;  %v254_v32 = vcombine.high %v233_v25, %v233_v25  ;;  %v215_v34 = vcombine.high %v207_v26, %v207_v26 }
 0x10a   :  { %v2377_v33 = vrot.slane %v207_v26, 9  ;;  %v243_v35 = vrot.slane %v236_v27, %v3433_v15  ;;  %2381 = vst.sshfl [vmem:[#allocation2 + $0x9] sm:$0x1 pattern:$0x76325410] %v236_v27  ;;  %v277_v36 = vrot.slane %v180_v28, %v3433_v15  ;;  %v308_v37 = vcombine.high %v180_v28, %v180_v28  ;;  %v167_v38 = vpop.f32.mrf.mxu0  ;;  %v569_v25 = vld [vmem:[%s4899_s2 + $0x178] sm:$0xff] }
 0x10b   :  { %268 = vst [vmem:[#allocation2 + $0x10] sm:$0x1] %v180_v28  ;;  %221 = vst [vmem:[#allocation2 + $0x6] sm:$0x1] %v2378_v30  ;;  %v2384_v39 = vrot.slane %v254_v32, 9  ;;  %v181_v40 = vmax.f32 %v163_v29, 0.0 }
 0x10c   :  { %249 = vst [vmem:[#allocation2 + $0xa] sm:$0x1] %v2382_v31  ;;  %256 = vst [vmem:[#allocation2 + $0xc] sm:$0x1] %v254_v32  ;;  %v182_v41 = vmax.f32 %v167_v38, 0.0  ;;  %v2379_v42 = vrot.slane %v215_v34, 9  ;;  %v257_v44 = vcombine.high %v243_v35, %v243_v35  ;;  %v169_v46 = vpop.f32.mrf.mxu0  ;;  %v294_v47 = vcombine.high %v277_v36, %v277_v36 }
 0x10d   :  { %211 = vst [vmem:[#allocation2 + $0x3] sm:$0x1] %v2377_v33  ;;  %217 = vst [vmem:[#allocation2 + $0x5] sm:$0x1] %v215_v34  ;;  %v2383_v43 = vrot.slane %v243_v35, 9  ;;  %v2386_v45 = vrot.slane %v277_v36, 9  ;;  %v315_v48 = vrot.slane %v308_v37, %v3433_v15  ;;  %v289_v49 = vrot.slane %v181_v40, %v3433_v15 }
 0x10e   :  { %2390 = vst.sshfl [vmem:[#allocation2 + $0x18] sm:$0x1 pattern:$0x76325410] %v308_v37  ;;  %263 = vst [vmem:[#allocation2 + $0xe] sm:$0x1] %v2384_v39  ;;  %v318_v50 = vcombine.high %v181_v40, %v181_v40  ;;  %v359_v52 = vrot.slane %v182_v41, %v3433_v15  ;;  %v390_v53 = vcombine.high %v182_v41, %v182_v41 }
 0x10f   :  { %269 = vst [vmem:[#allocation2 + $0x11] sm:$0x1] %v181_v40  ;;  %350 = vst [vmem:[#allocation2 + $0x20] sm:$0x1] %v182_v41  ;;  %v2385_v51 = vrot.slane %v257_v44, 9  ;;  %v183_v54 = vmax.f32 %v169_v46, 0.0  ;;  %v336_v57 = vcombine.high %v315_v48, %v315_v48  ;;  %v297_v59 = vcombine.high %v289_v49, %v289_v49 }
 0x110   :  { %225 = vst [vmem:[#allocation2 + $0x7] sm:$0x1] %v2379_v42  ;;  %253 = vst [vmem:[#allocation2 + $0xb] sm:$0x1] %v2383_v43  ;;  %v2388_v55 = vrot.slane %v294_v47, 9  ;;  %v2392_v56 = vrot.slane %v315_v48, 9  ;;  %v325_v60 = vrot.slane %v318_v50, %v3433_v15  ;;  %v376_v62 = vcombine.high %v359_v52, %v359_v52 }
 0x111   :  { %259 = vst [vmem:[#allocation2 + $0xd] sm:$0x1] %v257_v44  ;;  %281 = vst [vmem:[#allocation2 + $0x12] sm:$0x1] %v2386_v45  ;;  %v2387_v58 = vrot.slane %v289_v49, 9  ;;  %v2396_v61 = vrot.slane %v359_v52, 9  ;;  %v397_v0 = vrot.slane %v390_v53, %v3433_v15  ;;  %v371_v1 = vrot.slane %v183_v54, %v3433_v15 }
 0x112   :  { %296 = vst [vmem:[#allocation2 + $0x14] sm:$0x1] %v294_v47  ;;  %2391 = vst.sshfl [vmem:[#allocation2 + $0x19] sm:$0x1 pattern:$0x76325410] %v318_v50  ;;  %v400_v2 = vcombine.high %v183_v54, %v183_v54  ;;  %v339_v5 = vcombine.high %v325_v60, %v325_v60 }
 0x113   :  { %267 = vst [vmem:[#allocation2 + $0xf] sm:$0x1] %v2385_v51  ;;  %2400 = vst.sshfl [vmem:[#allocation2 + $0x28] sm:$0x1 pattern:$0x76325410] %v390_v53  ;;  %v418_v8 = vcombine.high %v397_v0, %v397_v0  ;;  %v379_v10 = vcombine.high %v371_v1, %v371_v1 }
 0x114   :  { %351 = vst [vmem:[#allocation2 + $0x21] sm:$0x1] %v183_v54  ;;  %303 = vst [vmem:[#allocation2 + $0x16] sm:$0x1] %v2388_v55  ;;  %v2394_v63 = vrot.slane %v336_v57, 9  ;;  %v2389_v3 = vrot.slane %v297_v59, 9  ;;  %v407_v12 = vrot.slane %v400_v2, %v3433_v15 }
 0x115   :  { %331 = vst [vmem:[#allocation2 + $0x1a] sm:$0x1] %v2392_v56  ;;  %338 = vst [vmem:[#allocation2 + $0x1c] sm:$0x1] %v336_v57  ;;  %v2393_v4 = vrot.slane %v325_v60, 9  ;;  %v2398_v6 = vrot.slane %v376_v62, 9 }
 0x116   :  { %293 = vst [vmem:[#allocation2 + $0x13] sm:$0x1] %v2387_v58  ;;  %299 = vst [vmem:[#allocation2 + $0x15] sm:$0x1] %v297_v59  ;;  %v2402_v7 = vrot.slane %v397_v0, 9  ;;  %v2397_v9 = vrot.slane %v371_v1, 9  ;;  %v421_v20 = vcombine.high %v407_v12, %v407_v12 }
 0x117   :  { %363 = vst [vmem:[#allocation2 + $0x22] sm:$0x1] %v2396_v61  ;;  %378 = vst [vmem:[#allocation2 + $0x24] sm:$0x1] %v376_v62  ;;  %v2395_v11 = vrot.slane %v339_v5, 9  ;;  %v514_v13 = vld [vmem:[#allocation2] sm:$0xff] }
 0x118   :  { %345 = vst [vmem:[#allocation2 + $0x1e] sm:$0x1] %v2394_v63  ;;  %2401 = vst.sshfl [vmem:[#allocation2 + $0x29] sm:$0x1 pattern:$0x76325410] %v400_v2  ;;  %v1047_v17 = vcombine.high %v514_v13, %v514_v13  ;;  %v1054_v18 = vrot.slane %v514_v13, %v3433_v15 }
 0x119   :  { %307 = vst [vmem:[#allocation2 + $0x17] sm:$0x1] %v2389_v3  ;;  %335 = vst [vmem:[#allocation2 + $0x1b] sm:$0x1] %v2393_v4  ;;  %v2404_v14 = vrot.slane %v418_v8, 9  ;;  %v2399_v16 = vrot.slane %v379_v10, 9 }
 0x11a   :  { %341 = vst [vmem:[#allocation2 + $0x1d] sm:$0x1] %v339_v5  ;;  %385 = vst [vmem:[#allocation2 + $0x26] sm:$0x1] %v2398_v6  ;;  %v2403_v19 = vrot.slane %v407_v12, 9  ;;  %v3448_v21 = vld [vmem:[#allocation2 + $0x8] sm:$0xff]  ;;  %v1062_v22 = vcombine.high %v1054_v18, %v1054_v18  ;;  %v3451_v23 = vrot.slane %v1047_v17, %v3433_v15 }
 0x11b   :  { %413 = vst [vmem:[#allocation2 + $0x2a] sm:$0x1] %v2402_v7  ;;  %420 = vst [vmem:[#allocation2 + $0x2c] sm:$0x1] %v418_v8  ;;  %v1071_v24 = vrot.slane %v3448_v21, %v3433_v15  ;;  %v2405_v26 = vrot.slane %v421_v20, 9  ;;  %v584_v27 = vld [vmem:[%s4899_s2 + $0x1f0] sm:$0xff]  ;;  %v1064_v12 = vcombine.high %v3448_v21, %v3448_v21 }
 0x11c   :  { %375 = vst [vmem:[#allocation2 + $0x23] sm:$0x1] %v2397_v9  ;;  %381 = vst [vmem:[#allocation2 + $0x25] sm:$0x1] %v379_v10  ;;  %1279 = vmatprep.mubr.f32.mxu1 %v1062_v22  ;;  %v1063_v28 = vcombine.high %v3451_v23, %v3451_v23  ;;  %v568_v30 = vld [vmem:[%s4899_s2 + $0x170] sm:$0xff]  ;;  %v583_v31 = vld [vmem:[%s4899_s2 + $0x1e8] sm:$0xff] }
 0x11d   :  { %349 = vst [vmem:[#allocation2 + $0x1f] sm:$0x1] %v2395_v11  ;;  %427 = vst [vmem:[#allocation2 + $0x2e] sm:$0x1] %v2404_v14  ;;  %v1079_v29 = vcombine.high %v1071_v24, %v1071_v24  ;;  %1280 = vmatmul.mubr.f32.vlgmr.msra.gmra.mxu1 %v1054_v18  ;;  %v665_v32 = vld [vmem:[%s4899_s2 + $0x478] sm:$0xff]  ;;  %v567_v33 = vld [vmem:[%s4899_s2 + $0x168] sm:$0xff] }
 0x11e   :  { %389 = vst [vmem:[#allocation2 + $0x27] sm:$0x1] %v2399_v16  ;;  %417 = vst [vmem:[#allocation2 + $0x2b] sm:$0x1] %v2403_v19  ;;  %2455 = vmatpush3.msra.mxu1 %v569_v25  ;;  %1349 = vmatprep.mubr.f32.mxu1 %v1063_v28  ;;  %v680_v34 = vld [vmem:[%s4899_s2 + $0x4f0] sm:$0xff]  ;;  %v582_v35 = vld [vmem:[%s4899_s2 + $0x1e0] sm:$0xff] }
 0x11f   :  { %423 = vst [vmem:[#allocation2 + $0x2d] sm:$0x1] %v421_v20  ;;  %431 = vst [vmem:[#allocation2 + $0x2f] sm:$0x1] %v2405_v26  ;;  %2456 = vmatprep.subr.mxu1 %v584_v27  ;;  %1419 = vmatprep.mubr.f32.mxu0 %v1079_v29  ;;  %v664_v36 = vld [vmem:[%s4899_s2 + $0x470] sm:$0xff]  ;;  %v566_v37 = vld [vmem:[%s4899_s2 + $0x160] sm:$0xff]  ;;  %v173_v29 = vpop.f32.mrf.mxu0 }
 0x120   :  { %2457 = vmatpush3.msra.mxu1 %v568_v30  ;;  %1420 = vmatmul.mubr.f32.vlgmr.msra.gmra.mxu0 %v1071_v24  ;;  %v679_v38 = vld [vmem:[%s4899_s2 + $0x4e8] sm:$0xff]  ;;  %v581_v39 = vld [vmem:[%s4899_s2 + $0x1d8] sm:$0xff]  ;;  %v678_v42 = vld [vmem:[%s4899_s2 + $0x4e0] sm:$0xff]  ;;  %v3630_v24 = vrot.slane %v1064_v12, %v3433_v15 }
 0x121   :  { %2458 = vmatprep.subr.mxu1 %v583_v31  ;;  %2560 = vmatpush3.msra.mxu0 %v665_v32  ;;  %v663_v40 = vld [vmem:[%s4899_s2 + $0x468] sm:$0xff]  ;;  %v565_v41 = vld [vmem:[%s4899_s2 + $0x158] sm:$0xff]  ;;  %v580_v43 = vld [vmem:[%s4899_s2 + $0x1d0] sm:$0xff]  ;;  %v184_v31 = vmax.f32 %v173_v29, 0.0 }
 0x122   :  { %2459 = vmatpush3.msra.mxu1 %v567_v33  ;;  %2561 = vmatprep.subr.mxu0 %v680_v34  ;;  %v662_v44 = vld [vmem:[%s4899_s2 + $0x460] sm:$0xff]  ;;  %v564_v45 = vld [vmem:[%s4899_s2 + $0x150] sm:$0xff]  ;;  %v677_v46 = vld [vmem:[%s4899_s2 + $0x4d8] sm:$0xff]  ;;  %v175_v33 = vpop.f32.mrf.mxu0  ;;  %v1080_v34 = vcombine.high %v3630_v24, %v3630_v24 }
 0x123   :  { %2460 = vmatprep.subr.mxu1 %v582_v35  ;;  %2562 = vmatpush3.msra.mxu0 %v664_v36  ;;  %v579_v47 = vld [vmem:[%s4899_s2 + $0x1c8] sm:$0xff]  ;;  %v661_v48 = vld [vmem:[%s4899_s2 + $0x458] sm:$0xff]  ;;  %v676_v50 = vld [vmem:[%s4899_s2 + $0x4d0] sm:$0xff]  ;;  %432 = vst [vmem:[#allocation2 + $0x30] sm:$0x1] %v184_v31 }
 0x124   :  { %2461 = vmatpush3.msra.mxu1 %v566_v37  ;;  %2563 = vmatprep.subr.mxu0 %v679_v38  ;;  %v563_v49 = vld [vmem:[%s4899_s2 + $0x148] sm:$0xff]  ;;  %v578_v51 = vld [vmem:[%s4899_s2 + $0x1c0] sm:$0xff]  ;;  %v660_v52 = vld [vmem:[%s4899_s2 + $0x450] sm:$0xff]  ;;  %v441_v37 = vrot.slane %v184_v31, %v3433_v15  ;;  %v472_v38 = vcombine.high %v184_v31, %v184_v31 }
 0x125   :  { %2462 = vmatprep.subr.mxu1 %v581_v39  ;;  %2564 = vmatpush3.msra.mxu0 %v663_v40  ;;  %v562_v53 = vld [vmem:[%s4899_s2 + $0x140] sm:$0xff]  ;;  %v675_v54 = vld [vmem:[%s4899_s2 + $0x4c8] sm:$0xff]  ;;  %v577_v55 = vld [vmem:[%s4899_s2 + $0x1b8] sm:$0xff]  ;;  %v185_v39 = vmax.f32 %v175_v33, 0.0 }
 0x126   :  { %2463 = vmatpush3.msra.mxu1 %v565_v41  ;;  %2565 = vmatprep.subr.mxu0 %v678_v42  ;;  %v659_v56 = vld [vmem:[%s4899_s2 + $0x448] sm:$0xff]  ;;  %v561_v57 = vld [vmem:[%s4899_s2 + $0x138] sm:$0xff]  ;;  %v674_v58 = vld [vmem:[%s4899_s2 + $0x4c0] sm:$0xff] }
 0x127   :  { %2464 = vmatprep.subr.mxu1 %v580_v43  ;;  %2566 = vmatpush3.msra.mxu0 %v662_v44  ;;  %v576_v59 = vld [vmem:[%s4899_s2 + $0x1b0] sm:$0xff]  ;;  %v658_v60 = vld [vmem:[%s4899_s2 + $0x440] sm:$0xff]  ;;  %v673_v62 = vld [vmem:[%s4899_s2 + $0x4b8] sm:$0xff]  ;;  %v2406_v44 = vrot.slane %v441_v37, 9  ;;  %433 = vst [vmem:[#allocation2 + $0x31] sm:$0x1] %v185_v39 }
 0x128   :  { %2465 = vmatpush3.msra.mxu1 %v564_v45  ;;  %2567 = vmatprep.subr.mxu0 %v677_v46  ;;  %v560_v61 = vld [vmem:[%s4899_s2 + $0x130] sm:$0xff]  ;;  %v575_v63 = vld [vmem:[%s4899_s2 + $0x1a8] sm:$0xff]  ;;  %v657_v0 = vld [vmem:[%s4899_s2 + $0x438] sm:$0xff]  ;;  %v458_v45 = vcombine.high %v441_v37, %v441_v37  ;;  %v479_v46 = vrot.slane %v472_v38, %v3433_v15 }
 0x129   :  { %2466 = vmatprep.subr.mxu1 %v579_v47  ;;  %2568 = vmatpush3.msra.mxu0 %v661_v48  ;;  %v559_v1 = vld [vmem:[%s4899_s2 + $0x128] sm:$0xff]  ;;  %v672_v2 = vld [vmem:[%s4899_s2 + $0x4b0] sm:$0xff]  ;;  %v574_v3 = vld [vmem:[%s4899_s2 + $0x1a0] sm:$0xff]  ;;  %v453_v47 = vrot.slane %v185_v39, %v3433_v15  ;;  %445 = vst [vmem:[#allocation2 + $0x32] sm:$0x1] %v2406_v44 }
 0x12a   :  { %2467 = vmatpush3.msra.mxu1 %v563_v49  ;;  %2569 = vmatprep.subr.mxu0 %v676_v50  ;;  %v656_v4 = vld [vmem:[%s4899_s2 + $0x430] sm:$0xff]  ;;  %v558_v5 = vld [vmem:[%s4899_s2 + $0x120] sm:$0xff]  ;;  %v671_v6 = vld [vmem:[%s4899_s2 + $0x4a8] sm:$0xff]  ;;  %v482_v49 = vcombine.high %v185_v39, %v185_v39  ;;  %460 = vst [vmem:[#allocation2 + $0x34] sm:$0x1] %v458_v45 }
 0x12b   :  { %2468 = vmatprep.subr.mxu1 %v578_v51  ;;  %2570 = vmatpush3.msra.mxu0 %v660_v52  ;;  %v573_v7 = vld [vmem:[%s4899_s2 + $0x198] sm:$0xff]  ;;  %v655_v8 = vld [vmem:[%s4899_s2 + $0x428] sm:$0xff]  ;;  %v670_v10 = vld [vmem:[%s4899_s2 + $0x4a0] sm:$0xff]  ;;  %v2408_v52 = vrot.slane %v458_v45, 9 }
 0x12c   :  { %2469 = vmatpush3.msra.mxu1 %v562_v53  ;;  %2571 = vmatprep.subr.mxu0 %v675_v54  ;;  %v557_v9 = vld [vmem:[%s4899_s2 + $0x118] sm:$0xff]  ;;  %v572_v11 = vld [vmem:[%s4899_s2 + $0x190] sm:$0xff]  ;;  %v654_v13 = vld [vmem:[%s4899_s2 + $0x420] sm:$0xff]  ;;  %v2412_v53 = vrot.slane %v479_v46, 9  ;;  %v500_v54 = vcombine.high %v479_v46, %v479_v46 }
 0x12d   :  { %2470 = vmatprep.subr.mxu1 %v577_v55  ;;  %2572 = vmatpush3.msra.mxu0 %v659_v56  ;;  %v556_v14 = vld [vmem:[%s4899_s2 + $0x110] sm:$0xff]  ;;  %v669_v16 = vld [vmem:[%s4899_s2 + $0x498] sm:$0xff]  ;;  %v571_v17 = vld [vmem:[%s4899_s2 + $0x188] sm:$0xff]  ;;  %v2407_v55 = vrot.slane %v453_v47, 9  ;;  %467 = vst [vmem:[#allocation2 + $0x36] sm:$0x1] %v2408_v52 }
 0x12e   :  { %2471 = vmatpush3.msra.mxu1 %v561_v57  ;;  %2573 = vmatprep.subr.mxu0 %v674_v58  ;;  %v653_v18 = vld [vmem:[%s4899_s2 + $0x418] sm:$0xff]  ;;  %v3618_v19 = vld [vmem:[#allocation2 + $0x10] sm:$0xff]  ;;  %v555_v20 = vld [vmem:[%s4899_s2 + $0x108] sm:$0xff]  ;;  %v461_v57 = vcombine.high %v453_v47, %v453_v47  ;;  %v489_v58 = vrot.slane %v482_v49, %v3433_v15  ;;  %495 = vst [vmem:[#allocation2 + $0x3a] sm:$0x1] %v2412_v53 }
 0x12f   :  { %2472 = vmatprep.subr.mxu1 %v576_v59  ;;  %2574 = vmatpush3.msra.mxu0 %v658_v60  ;;  %v668_v21 = vld [vmem:[%s4899_s2 + $0x490] sm:$0xff]  ;;  %v570_v22 = vld [vmem:[%s4899_s2 + $0x180] sm:$0xff]  ;;  %v667_v27 = vld [vmem:[%s4899_s2 + $0x488] sm:$0xff]  ;;  %v3643_v28 = vrot.slane %v3618_v19, %v3433_v15  ;;  %502 = vst [vmem:[#allocation2 + $0x3c] sm:$0x1] %v500_v54 }
 0x130   :  { %2473 = vmatpush3.msra.mxu1 %v560_v61  ;;  %2575 = vmatprep.subr.mxu0 %v673_v62  ;;  %v652_v25 = vld [vmem:[%s4899_s2 + $0x410] sm:$0xff]  ;;  %v554_v26 = vld [vmem:[%s4899_s2 + $0x100] sm:$0xff]  ;;  %v649_v30 = vld [vmem:[%s4899_s2 + $0x3f8] sm:$0xff]  ;;  %v2414_v61 = vrot.slane %v500_v54, 9  ;;  %457 = vst [vmem:[#allocation2 + $0x33] sm:$0x1] %v2407_v55 }
 0x131   :  { %2474 = vmatprep.subr.mxu1 %v575_v63  ;;  %2576 = vmatpush3.msra.mxu0 %v657_v0  ;;  %v633_v32 = vld [vmem:[%s4899_s2 + $0x378] sm:$0xff]  ;;  %v648_v35 = vld [vmem:[%s4899_s2 + $0x3f0] sm:$0xff]  ;;  %v651_v36 = vld [vmem:[%s4899_s2 + $0x408] sm:$0xff]  ;;  %v1096_v42 = vcombine.high %v3643_v28, %v3643_v28  ;;  %463 = vst [vmem:[#allocation2 + $0x35] sm:$0x1] %v461_v57  ;;  %v2409_v0 = vrot.slane %v461_v57, 9 }
 0x132   :  { %2475 = vmatpush3.msra.mxu1 %v559_v1  ;;  %2577 = vmatprep.subr.mxu0 %v672_v2  ;;  %v632_v40 = vld [vmem:[%s4899_s2 + $0x370] sm:$0xff]  ;;  %v666_v41 = vld [vmem:[%s4899_s2 + $0x480] sm:$0xff]  ;;  %v647_v43 = vld [vmem:[%s4899_s2 + $0x3e8] sm:$0xff]  ;;  %v2413_v1 = vrot.slane %v489_v58, 9  ;;  %v503_v2 = vcombine.high %v489_v58, %v489_v58  ;;  %509 = vst [vmem:[#allocation2 + $0x3e] sm:$0x1] %v2414_v61 }
 0x133   :  { %2476 = vmatprep.subr.mxu1 %v574_v3  ;;  %2578 = vmatpush3.msra.mxu0 %v656_v4  ;;  %2410 = vst.sshfl [vmem:[#allocation2 + $0x38] sm:$0x1 pattern:$0x76325410] %v472_v38  ;;  %v631_v48 = vld [vmem:[%s4899_s2 + $0x368] sm:$0xff]  ;;  %v646_v50 = vld [vmem:[%s4899_s2 + $0x3e0] sm:$0xff] }
 0x134   :  { %2477 = vmatpush3.msra.mxu1 %v558_v5  ;;  %2579 = vmatprep.subr.mxu0 %v671_v6  ;;  %v745_v51 = vld [vmem:[%s4899_s2 + $0x6f8] sm:$0xff]  ;;  %v630_v56 = vld [vmem:[%s4899_s2 + $0x360] sm:$0xff]  ;;  %2411 = vst.sshfl [vmem:[#allocation2 + $0x39] sm:$0x1 pattern:$0x76325410] %v482_v49 }
 0x135   :  { %2478 = vmatprep.subr.mxu1 %v573_v7  ;;  %2580 = vmatpush3.msra.mxu0 %v655_v8  ;;  %v645_v59 = vld [vmem:[%s4899_s2 + $0x3d8] sm:$0xff]  ;;  %v744_v63 = vld [vmem:[%s4899_s2 + $0x6f0] sm:$0xff]  ;;  %v743_v6 = vld [vmem:[%s4899_s2 + $0x6e8] sm:$0xff]  ;;  %471 = vst [vmem:[#allocation2 + $0x37] sm:$0x1] %v2409_v0  ;;  %v2415_v7 = vrot.slane %v503_v2, 9 }
 0x136   :  { %2479 = vmatpush3.msra.mxu1 %v557_v9  ;;  %2581 = vmatprep.subr.mxu0 %v670_v10  ;;  %v729_v60 = vld [vmem:[%s4899_s2 + $0x678] sm:$0xff]  ;;  %v644_v3 = vld [vmem:[%s4899_s2 + $0x3d0] sm:$0xff]  ;;  %499 = vst [vmem:[#allocation2 + $0x3b] sm:$0x1] %v2413_v1  ;;  %505 = vst [vmem:[#allocation2 + $0x3d] sm:$0x1] %v503_v2 }
 0x137   :  { %2480 = vmatprep.subr.mxu1 %v572_v11  ;;  %2582 = vmatpush3.msra.mxu0 %v654_v13  ;;  %v629_v62 = vld [vmem:[%s4899_s2 + $0x358] sm:$0xff]  ;;  %v728_v4 = vld [vmem:[%s4899_s2 + $0x670] sm:$0xff]  ;;  %v643_v8 = vld [vmem:[%s4899_s2 + $0x3c8] sm:$0xff]  ;;  %513 = vst [vmem:[#allocation2 + $0x3f] sm:$0x1] %v2415_v7 }
 0x138   :  { %2481 = vmatpush3.msra.mxu1 %v556_v14  ;;  %2583 = vmatprep.subr.mxu0 %v669_v16  ;;  %v628_v5 = vld [vmem:[%s4899_s2 + $0x350] sm:$0xff]  ;;  %v727_v9 = vld [vmem:[%s4899_s2 + $0x668] sm:$0xff]  ;;  %v742_v11 = vld [vmem:[%s4899_s2 + $0x6e0] sm:$0xff] }
 0x139   :  { %2482 = vmatprep.subr.mxu1 %v571_v17  ;;  %2584 = vmatpush3.msra.mxu0 %v653_v18  ;;  %v627_v10 = vld [vmem:[%s4899_s2 + $0x348] sm:$0xff]  ;;  %v642_v12 = vld [vmem:[%s4899_s2 + $0x3c0] sm:$0xff]  ;;  %v741_v16 = vld [vmem:[%s4899_s2 + $0x6d8] sm:$0xff] }
 0x13a   :  { %2483 = vmatpush3.msra.mxu1 %v555_v20  ;;  %2585 = vmatprep.subr.mxu0 %v668_v21  ;;  %v726_v13 = vld [vmem:[%s4899_s2 + $0x660] sm:$0xff]  ;;  %v641_v17 = vld [vmem:[%s4899_s2 + $0x3b8] sm:$0xff]  ;;  %v740_v21 = vld [vmem:[%s4899_s2 + $0x6d0] sm:$0xff] }
 0x13b   :  { %2484 = vmatprep.subr.mxu1 %v570_v22  ;;  %2586 = vmatpush3.msra.mxu0 %v652_v25  ;;  %v626_v14 = vld [vmem:[%s4899_s2 + $0x340] sm:$0xff]  ;;  %v725_v18 = vld [vmem:[%s4899_s2 + $0x658] sm:$0xff]  ;;  %v640_v22 = vld [vmem:[%s4899_s2 + $0x3b0] sm:$0xff] }
 0x13c   :  { %2485 = vmatpush3.msra.mxu1 %v554_v26  ;;  %2587 = vmatprep.subr.mxu0 %v667_v27  ;;  %v625_v20 = vld [vmem:[%s4899_s2 + $0x338] sm:$0xff]  ;;  %v724_v25 = vld [vmem:[%s4899_s2 + $0x650] sm:$0xff]  ;;  %v739_v27 = vld [vmem:[%s4899_s2 + $0x6c8] sm:$0xff] }
 0x13d   :  { %1350 = vmatmul.mubr.f32.vlgmr.msra.gmra.mxu1 %v3451_v23  ;;  %2524 = vmatprep.subr.mxu1 %v649_v30  ;;  %v650_v23 = vld [vmem:[%s4899_s2 + $0x400] sm:$0xff]  ;;  %v624_v26 = vld [vmem:[%s4899_s2 + $0x330] sm:$0xff]  ;;  %v723_v29 = vld [vmem:[%s4899_s2 + $0x648] sm:$0xff] }
 0x13e   :  { %2525 = vmatpush3.msra.mxu1 %v633_v32  ;;  %1489 = vmatprep.mubr.f32.mxu1 %v1080_v34  ;;  %v623_v30 = vld [vmem:[%s4899_s2 + $0x328] sm:$0xff]  ;;  %v738_v31 = vld [vmem:[%s4899_s2 + $0x6c0] sm:$0xff]  ;;  %v721_v37 = vld [vmem:[%s4899_s2 + $0x638] sm:$0xff] }
 0x13f   :  { %2526 = vmatprep.subr.mxu1 %v648_v35  ;;  %2588 = vmatpush3.msra.mxu0 %v651_v36  ;;  %v638_v32 = vld [vmem:[%s4899_s2 + $0x3a0] sm:$0xff]  ;;  %v737_v35 = vld [vmem:[%s4899_s2 + $0x6b8] sm:$0xff]  ;;  %v736_v39 = vld [vmem:[%s4899_s2 + $0x6b0] sm:$0xff] }
 0x140   :  { %2527 = vmatpush3.msra.mxu1 %v632_v40  ;;  %2589 = vmatprep.subr.mxu0 %v666_v41  ;;  %v722_v33 = vld [vmem:[%s4899_s2 + $0x640] sm:$0xff]  ;;  %v637_v36 = vld [vmem:[%s4899_s2 + $0x398] sm:$0xff]  ;;  %v636_v40 = vld [vmem:[%s4899_s2 + $0x390] sm:$0xff] }
 0x141   :  { %2528 = vmatprep.subr.mxu1 %v647_v43  ;;  %2590 = vmatpush3.msra.mxu0 %v650_v23  ;;  %v622_v34 = vld [vmem:[%s4899_s2 + $0x320] sm:$0xff]  ;;  %v621_v38 = vld [vmem:[%s4899_s2 + $0x318] sm:$0xff]  ;;  %v720_v41 = vld [vmem:[%s4899_s2 + $0x630] sm:$0xff] }
 0x142   :  { %2529 = vmatpush3.msra.mxu1 %v631_v48  ;;  %1559 = vmatprep.mubr.f32.mxu0 %v1096_v42  ;;  %v620_v42 = vld [vmem:[%s4899_s2 + $0x310] sm:$0xff]  ;;  %v735_v43 = vld [vmem:[%s4899_s2 + $0x6a8] sm:$0xff]  ;;  %v734_v46 = vld [vmem:[%s4899_s2 + $0x6a0] sm:$0xff] }
 0x143   :  { %2530 = vmatprep.subr.mxu1 %v646_v50  ;;  %2629 = vmatprep.subr.mxu0 %v745_v51  ;;  %v635_v23 = vld [vmem:[%s4899_s2 + $0x388] sm:$0xff]  ;;  %v634_v47 = vld [vmem:[%s4899_s2 + $0x380] sm:$0xff]  ;;  %v733_v50 = vld [vmem:[%s4899_s2 + $0x698] sm:$0xff] }
 0x144   :  { %2531 = vmatpush3.msra.mxu1 %v630_v56  ;;  %1560 = vmatmul.mubr.f32.vlgmr.msra.gmra.mxu0 %v3643_v28  ;;  %v639_v28 = vld [vmem:[%s4899_s2 + $0x3a8] sm:$0xff]  ;;  %v718_v48 = vld [vmem:[%s4899_s2 + $0x620] sm:$0xff]  ;;  %v713_v51 = vld [vmem:[%s4899_s2 + $0x5f8] sm:$0xff] }
 0x145   :  { %2532 = vmatprep.subr.mxu1 %v645_v59  ;;  %2630 = vmatpush3.msra.mxu0 %v729_v60  ;;  %v719_v44 = vld [vmem:[%s4899_s2 + $0x628] sm:$0xff]  ;;  %v618_v49 = vld [vmem:[%s4899_s2 + $0x300] sm:$0xff]  ;;  %v3838_v52 = vld [vmem:[#allocation2 + $0x18] sm:$0xff] }
 0x146   :  { %2533 = vmatpush3.msra.mxu1 %v629_v62  ;;  %2631 = vmatprep.subr.mxu0 %v744_v63  ;;  %v619_v45 = vld [vmem:[%s4899_s2 + $0x308] sm:$0xff]  ;;  %v697_v53 = vld [vmem:[%s4899_s2 + $0x578] sm:$0xff]  ;;  %v712_v55 = vld [vmem:[%s4899_s2 + $0x5f0] sm:$0xff]  ;;  %v1105_v59 = vrot.slane %v3838_v52, %v3433_v15  ;;  %v1081_v63 = vcombine.high %v3618_v19, %v3618_v19 }
 0x147   :  { %2534 = vmatprep.subr.mxu1 %v644_v3  ;;  %2632 = vmatpush3.msra.mxu0 %v728_v4  ;;  %v717_v54 = vld [vmem:[%s4899_s2 + $0x618] sm:$0xff]  ;;  %v732_v56 = vld [vmem:[%s4899_s2 + $0x690] sm:$0xff]  ;;  %v711_v60 = vld [vmem:[%s4899_s2 + $0x5e8] sm:$0xff] }
 0x148   :  { %2535 = vmatpush3.msra.mxu1 %v628_v5  ;;  %2633 = vmatprep.subr.mxu0 %v743_v6  ;;  %v696_v57 = vld [vmem:[%s4899_s2 + $0x570] sm:$0xff]  ;;  %v695_v61 = vld [vmem:[%s4899_s2 + $0x568] sm:$0xff]  ;;  %v710_v0 = vld [vmem:[%s4899_s2 + $0x5e0] sm:$0xff]  ;;  %v1113_v3 = vcombine.high %v1105_v59, %v1105_v59  ;;  %v3894_v6 = vrot.slane %v1081_v63, %v3433_v15 }
 0x149   :  { %2536 = vmatprep.subr.mxu1 %v643_v8  ;;  %2634 = vmatpush3.msra.mxu0 %v727_v9  ;;  %v716_v58 = vld [vmem:[%s4899_s2 + $0x610] sm:$0xff]  ;;  %v715_v62 = vld [vmem:[%s4899_s2 + $0x608] sm:$0xff]  ;;  %v730_v1 = vld [vmem:[%s4899_s2 + $0x680] sm:$0xff] }
 0x14a   :  { %2537 = vmatpush3.msra.mxu1 %v627_v10  ;;  %2635 = vmatprep.subr.mxu0 %v742_v11  ;;  %v694_v2 = vld [vmem:[%s4899_s2 + $0x560] sm:$0xff]  ;;  %v709_v4 = vld [vmem:[%s4899_s2 + $0x5d8] sm:$0xff]  ;;  %v708_v7 = vld [vmem:[%s4899_s2 + $0x5d0] sm:$0xff] }
 0x14b   :  { %2538 = vmatprep.subr.mxu1 %v642_v12  ;;  %2636 = vmatpush3.msra.mxu0 %v726_v13  ;;  %v714_v19 = vld [vmem:[%s4899_s2 + $0x600] sm:$0xff]  ;;  %v693_v5 = vld [vmem:[%s4899_s2 + $0x558] sm:$0xff]  ;;  %v692_v9 = vld [vmem:[%s4899_s2 + $0x550] sm:$0xff] }
 0x14c   :  { %2539 = vmatpush3.msra.mxu1 %v626_v14  ;;  %2637 = vmatprep.subr.mxu0 %v741_v16  ;;  %v809_v8 = vld [vmem:[%s4899_s2 + $0x8f8] sm:$0xff]  ;;  %v707_v11 = vld [vmem:[%s4899_s2 + $0x5c8] sm:$0xff]  ;;  %v808_v12 = vld [vmem:[%s4899_s2 + $0x8f0] sm:$0xff]  ;;  %v1097_v16 = vcombine.high %v3894_v6, %v3894_v6 }
 0x14d   :  { %2540 = vmatprep.subr.mxu1 %v641_v17  ;;  %2638 = vmatpush3.msra.mxu0 %v725_v18  ;;  %v793_v10 = vld [vmem:[%s4899_s2 + $0x878] sm:$0xff]  ;;  %v691_v13 = vld [vmem:[%s4899_s2 + $0x548] sm:$0xff]  ;;  %v792_v14 = vld [vmem:[%s4899_s2 + $0x870] sm:$0xff] }
 0x14e   :  { %2541 = vmatpush3.msra.mxu1 %v625_v20  ;;  %2639 = vmatprep.subr.mxu0 %v740_v21  ;;  %v706_v17 = vld [vmem:[%s4899_s2 + $0x5c0] sm:$0xff]  ;;  %v807_v20 = vld [vmem:[%s4899_s2 + $0x8e8] sm:$0xff]  ;;  %v705_v21 = vld [vmem:[%s4899_s2 + $0x5b8] sm:$0xff] }
 0x14f   :  { %2542 = vmatprep.subr.mxu1 %v640_v22  ;;  %2640 = vmatpush3.msra.mxu0 %v724_v25  ;;  %v690_v18 = vld [vmem:[%s4899_s2 + $0x540] sm:$0xff]  ;;  %v791_v22 = vld [vmem:[%s4899_s2 + $0x868] sm:$0xff]  ;;  %v689_v25 = vld [vmem:[%s4899_s2 + $0x538] sm:$0xff] }
 0x150   :  { %2543 = vmatpush3.msra.mxu1 %v624_v26  ;;  %2641 = vmatprep.subr.mxu0 %v739_v27  ;;  %v806_v26 = vld [vmem:[%s4899_s2 + $0x8e0] sm:$0xff]  ;;  %v704_v27 = vld [vmem:[%s4899_s2 + $0x5b0] sm:$0xff] }
 0x151   :  { %2544 = vmatprep.subr.mxu1 %v639_v28  ;;  %2642 = vmatpush3.msra.mxu0 %v723_v29  ;;  %v790_v28 = vld [vmem:[%s4899_s2 + $0x860] sm:$0xff]  ;;  %v688_v29 = vld [vmem:[%s4899_s2 + $0x530] sm:$0xff] }
 0x152   :  { %2545 = vmatpush3.msra.mxu1 %v623_v30  ;;  %2643 = vmatprep.subr.mxu0 %v738_v31  ;;  %v805_v30 = vld [vmem:[%s4899_s2 + $0x8d8] sm:$0xff]  ;;  %v703_v31 = vld [vmem:[%s4899_s2 + $0x5a8] sm:$0xff]  ;;  %v782_v63 = vld [vmem:[%s4899_s2 + $0x820] sm:$0xff] }
 0x153   :  { %2546 = vmatprep.subr.mxu1 %v638_v32  ;;  %2644 = vmatpush3.msra.mxu0 %v722_v33  ;;  %v789_v32 = vld [vmem:[%s4899_s2 + $0x858] sm:$0xff]  ;;  %v687_v33 = vld [vmem:[%s4899_s2 + $0x528] sm:$0xff] }
 0x154   :  { %2547 = vmatpush3.msra.mxu1 %v622_v34  ;;  %2645 = vmatprep.subr.mxu0 %v737_v35  ;;  %v804_v34 = vld [vmem:[%s4899_s2 + $0x8d0] sm:$0xff]  ;;  %v702_v35 = vld [vmem:[%s4899_s2 + $0x5a0] sm:$0xff] }
 0x155   :  { %2548 = vmatprep.subr.mxu1 %v637_v36  ;;  %2646 = vmatpush3.msra.mxu0 %v721_v37  ;;  %v788_v36 = vld [vmem:[%s4899_s2 + $0x850] sm:$0xff]  ;;  %v686_v37 = vld [vmem:[%s4899_s2 + $0x520] sm:$0xff] }
 0x156   :  { %2549 = vmatpush3.msra.mxu1 %v621_v38  ;;  %2647 = vmatprep.subr.mxu0 %v736_v39  ;;  %v803_v38 = vld [vmem:[%s4899_s2 + $0x8c8] sm:$0xff]  ;;  %v701_v39 = vld [vmem:[%s4899_s2 + $0x598] sm:$0xff] }
 0x157   :  { %2550 = vmatprep.subr.mxu1 %v636_v40  ;;  %2648 = vmatpush3.msra.mxu0 %v720_v41  ;;  %v787_v40 = vld [vmem:[%s4899_s2 + $0x848] sm:$0xff]  ;;  %v685_v41 = vld [vmem:[%s4899_s2 + $0x518] sm:$0xff] }
 0x158   :  { %2551 = vmatpush3.msra.mxu1 %v620_v42  ;;  %2649 = vmatprep.subr.mxu0 %v735_v43  ;;  %v802_v42 = vld [vmem:[%s4899_s2 + $0x8c0] sm:$0xff]  ;;  %v700_v43 = vld [vmem:[%s4899_s2 + $0x590] sm:$0xff] }
 0x159   :  { %2552 = vmatprep.subr.mxu1 %v635_v23  ;;  %2650 = vmatpush3.msra.mxu0 %v719_v44  ;;  %v1098_v23 = vcombine.high %v3838_v52, %v3838_v52  ;;  %v786_v44 = vld [vmem:[%s4899_s2 + $0x840] sm:$0xff] }
 0x15a   :  { %2553 = vmatpush3.msra.mxu1 %v619_v45  ;;  %2651 = vmatprep.subr.mxu0 %v734_v46  ;;  %v684_v45 = vld [vmem:[%s4899_s2 + $0x510] sm:$0xff]  ;;  %v801_v46 = vld [vmem:[%s4899_s2 + $0x8b8] sm:$0xff] }
 0x15b   :  { %2554 = vmatprep.subr.mxu1 %v634_v47  ;;  %2652 = vmatpush3.msra.mxu0 %v718_v48  ;;  %v699_v47 = vld [vmem:[%s4899_s2 + $0x588] sm:$0xff]  ;;  %v785_v48 = vld [vmem:[%s4899_s2 + $0x838] sm:$0xff]  ;;  %v4021_v52 = vrot.slane %v1098_v23, %v3433_v15 }
 0x15c   :  { %2555 = vmatpush3.msra.mxu1 %v618_v49  ;;  %2653 = vmatprep.subr.mxu0 %v733_v50  ;;  %v683_v49 = vld [vmem:[%s4899_s2 + $0x508] sm:$0xff]  ;;  %v800_v50 = vld [vmem:[%s4899_s2 + $0x8b0] sm:$0xff]  ;;  %v749_v23 = vld [vmem:[%s4899_s2 + $0x718] sm:$0xff] }
 0x15d   :  { %1490 = vmatmul.mubr.f32.vlgmr.msra.gmra.mxu1 %v3630_v24  ;;  %2594 = vmatprep.subr.mxu1 %v713_v51  ;;  %v731_v24 = vld [vmem:[%s4899_s2 + $0x688] sm:$0xff]  ;;  %v698_v51 = vld [vmem:[%s4899_s2 + $0x580] sm:$0xff] }
 0x15e   :  { %2595 = vmatpush3.msra.mxu1 %v697_v53  ;;  %2654 = vmatpush3.msra.mxu0 %v717_v54  ;;  %v784_v53 = vld [vmem:[%s4899_s2 + $0x830] sm:$0xff]  ;;  %v682_v54 = vld [vmem:[%s4899_s2 + $0x500] sm:$0xff] }
 0x15f   :  { %2596 = vmatprep.subr.mxu1 %v712_v55  ;;  %2655 = vmatprep.subr.mxu0 %v732_v56  ;;  %v799_v55 = vld [vmem:[%s4899_s2 + $0x8a8] sm:$0xff]  ;;  %v777_v56 = vld [vmem:[%s4899_s2 + $0x7f8] sm:$0xff] }
 0x160   :  { %2597 = vmatpush3.msra.mxu1 %v696_v57  ;;  %2656 = vmatpush3.msra.mxu0 %v716_v58  ;;  %v761_v57 = vld [vmem:[%s4899_s2 + $0x778] sm:$0xff]  ;;  %v1114_v58 = vcombine.high %v4021_v52, %v4021_v52 }
 0x161   :  { %2598 = vmatprep.subr.mxu1 %v711_v60  ;;  %2657 = vmatprep.subr.mxu0 %v731_v24  ;;  %v783_v60 = vld [vmem:[%s4899_s2 + $0x828] sm:$0xff]  ;;  %v760_v24 = vld [vmem:[%s4899_s2 + $0x770] sm:$0xff] }
 0x162   :  { %2599 = vmatpush3.msra.mxu1 %v695_v61  ;;  %2658 = vmatpush3.msra.mxu0 %v715_v62  ;;  %v798_v61 = vld [vmem:[%s4899_s2 + $0x8a0] sm:$0xff]  ;;  %v775_v62 = vld [vmem:[%s4899_s2 + $0x7e8] sm:$0xff] }
 0x163   :  { %2600 = vmatprep.subr.mxu1 %v710_v0  ;;  %2659 = vmatprep.subr.mxu0 %v730_v1  ;;  %v759_v0 = vld [vmem:[%s4899_s2 + $0x768] sm:$0xff]  ;;  %v797_v1 = vld [vmem:[%s4899_s2 + $0x898] sm:$0xff] }
 0x164   :  { %2601 = vmatpush3.msra.mxu1 %v694_v2  ;;  %2660 = vmatpush3.msra.mxu0 %v714_v19  ;;  %v4065_v2 = vld [vmem:[#allocation2 + $0x20] sm:$0xff] }
 0x165   :  { %2602 = vmatprep.subr.mxu1 %v709_v4  ;;  %1699 = vmatprep.mubr.f32.mxu0 %v1113_v3  ;;  %v774_v19 = vld [vmem:[%s4899_s2 + $0x7e0] sm:$0xff]  ;;  %v781_v3 = vld [vmem:[%s4899_s2 + $0x818] sm:$0xff] }
 0x166   :  { %2603 = vmatpush3.msra.mxu1 %v693_v5  ;;  %1700 = vmatmul.mubr.f32.vlgmr.msra.gmra.mxu0 %v1105_v59  ;;  %v776_v59 = vld [vmem:[%s4899_s2 + $0x7f0] sm:$0xff]  ;;  %v758_v4 = vld [vmem:[%s4899_s2 + $0x760] sm:$0xff] }
 0x167   :  { %2604 = vmatprep.subr.mxu1 %v708_v7  ;;  %2699 = vmatprep.subr.mxu0 %v809_v8  ;;  %v796_v5 = vld [vmem:[%s4899_s2 + $0x890] sm:$0xff]  ;;  %v1122_v8 = vrot.slane %v4065_v2, %v3433_v15 }
 0x168   :  { %2605 = vmatpush3.msra.mxu1 %v692_v9  ;;  %2700 = vmatpush3.msra.mxu0 %v793_v10  ;;  %v780_v7 = vld [vmem:[%s4899_s2 + $0x810] sm:$0xff]  ;;  %v757_v9 = vld [vmem:[%s4899_s2 + $0x758] sm:$0xff]  ;;  %v795_v10 = vld [vmem:[%s4899_s2 + $0x888] sm:$0xff] }
 0x169   :  { %2606 = vmatprep.subr.mxu1 %v707_v11  ;;  %2701 = vmatprep.subr.mxu0 %v808_v12  ;;  %v772_v11 = vld [vmem:[%s4899_s2 + $0x7d0] sm:$0xff]  ;;  %v779_v12 = vld [vmem:[%s4899_s2 + $0x808] sm:$0xff] }
 0x16a   :  { %2607 = vmatpush3.msra.mxu1 %v691_v13  ;;  %2702 = vmatpush3.msra.mxu0 %v792_v14  ;;  %v756_v13 = vld [vmem:[%s4899_s2 + $0x750] sm:$0xff]  ;;  %v794_v14 = vld [vmem:[%s4899_s2 + $0x880] sm:$0xff] }
 0x16b   :  { %2608 = vmatprep.subr.mxu1 %v706_v17  ;;  %1629 = vmatprep.mubr.f32.mxu1 %v1097_v16  ;;  %v771_v16 = vld [vmem:[%s4899_s2 + $0x7c8] sm:$0xff]  ;;  %v778_v17 = vld [vmem:[%s4899_s2 + $0x800] sm:$0xff] }
 0x16c   :  { %2609 = vmatpush3.msra.mxu1 %v690_v18  ;;  %2703 = vmatprep.subr.mxu0 %v807_v20  ;;  %v1130_v18 = vcombine.high %v1122_v8, %v1122_v8  ;;  %v755_v20 = vld [vmem:[%s4899_s2 + $0x748] sm:$0xff] }
 0x16d   :  { %2610 = vmatprep.subr.mxu1 %v705_v21  ;;  %2704 = vmatpush3.msra.mxu0 %v791_v22  ;;  %v770_v21 = vld [vmem:[%s4899_s2 + $0x7c0] sm:$0xff]  ;;  %v873_v22 = vld [vmem:[%s4899_s2 + $0xaf8] sm:$0xff] }
 0x16e   :  { %2611 = vmatpush3.msra.mxu1 %v689_v25  ;;  %2705 = vmatprep.subr.mxu0 %v806_v26  ;;  %v754_v25 = vld [vmem:[%s4899_s2 + $0x740] sm:$0xff]  ;;  %v769_v26 = vld [vmem:[%s4899_s2 + $0x7b8] sm:$0xff] }
 0x16f   :  { %2612 = vmatprep.subr.mxu1 %v704_v27  ;;  %2706 = vmatpush3.msra.mxu0 %v790_v28  ;;  %v857_v27 = vld [vmem:[%s4899_s2 + $0xa78] sm:$0xff] }
 0x170   :  { %2613 = vmatpush3.msra.mxu1 %v688_v29  ;;  %2707 = vmatprep.subr.mxu0 %v805_v30  ;;  %v753_v28 = vld [vmem:[%s4899_s2 + $0x738] sm:$0xff]  ;;  %v872_v29 = vld [vmem:[%s4899_s2 + $0xaf0] sm:$0xff] }
 0x171   :  { %2614 = vmatprep.subr.mxu1 %v703_v31  ;;  %2708 = vmatpush3.msra.mxu0 %v789_v32  ;;  %v768_v30 = vld [vmem:[%s4899_s2 + $0x7b0] sm:$0xff] }
 0x172   :  { %2615 = vmatpush3.msra.mxu1 %v687_v33  ;;  %2709 = vmatprep.subr.mxu0 %v804_v34  ;;  %v856_v31 = vld [vmem:[%s4899_s2 + $0xa70] sm:$0xff]  ;;  %v871_v33 = vld [vmem:[%s4899_s2 + $0xae8] sm:$0xff] }
 0x173   :  { %2616 = vmatprep.subr.mxu1 %v702_v35  ;;  %2710 = vmatpush3.msra.mxu0 %v788_v36  ;;  %v752_v32 = vld [vmem:[%s4899_s2 + $0x730] sm:$0xff]  ;;  %v767_v34 = vld [vmem:[%s4899_s2 + $0x7a8] sm:$0xff] }
 0x174   :  { %2617 = vmatpush3.msra.mxu1 %v686_v37  ;;  %2711 = vmatprep.subr.mxu0 %v803_v38  ;;  %v855_v35 = vld [vmem:[%s4899_s2 + $0xa68] sm:$0xff]  ;;  %v870_v37 = vld [vmem:[%s4899_s2 + $0xae0] sm:$0xff] }
 0x175   :  { %2618 = vmatprep.subr.mxu1 %v701_v39  ;;  %2712 = vmatpush3.msra.mxu0 %v787_v40  ;;  %v751_v36 = vld [vmem:[%s4899_s2 + $0x728] sm:$0xff]  ;;  %v766_v38 = vld [vmem:[%s4899_s2 + $0x7a0] sm:$0xff] }
 0x176   :  { %2619 = vmatpush3.msra.mxu1 %v685_v41  ;;  %2713 = vmatprep.subr.mxu0 %v802_v42  ;;  %v854_v39 = vld [vmem:[%s4899_s2 + $0xa60] sm:$0xff]  ;;  %v869_v41 = vld [vmem:[%s4899_s2 + $0xad8] sm:$0xff] }
 0x177   :  { %2620 = vmatprep.subr.mxu1 %v700_v43  ;;  %2714 = vmatpush3.msra.mxu0 %v786_v44  ;;  %v750_v40 = vld [vmem:[%s4899_s2 + $0x720] sm:$0xff]  ;;  %v765_v42 = vld [vmem:[%s4899_s2 + $0x798] sm:$0xff]  ;;  %v868_v44 = vld [vmem:[%s4899_s2 + $0xad0] sm:$0xff] }
 0x178   :  { %2621 = vmatpush3.msra.mxu1 %v684_v45  ;;  %2715 = vmatprep.subr.mxu0 %v801_v46  ;;  %v853_v43 = vld [vmem:[%s4899_s2 + $0xa58] sm:$0xff]  ;;  %v764_v45 = vld [vmem:[%s4899_s2 + $0x790] sm:$0xff] }
 0x179   :  { %2622 = vmatprep.subr.mxu1 %v699_v47  ;;  %2716 = vmatpush3.msra.mxu0 %v785_v48  ;;  %v852_v46 = vld [vmem:[%s4899_s2 + $0xa50] sm:$0xff]  ;;  %v867_v48 = vld [vmem:[%s4899_s2 + $0xac8] sm:$0xff] }
 0x17a   :  { %2623 = vmatpush3.msra.mxu1 %v683_v49  ;;  %2717 = vmatprep.subr.mxu0 %v800_v50  ;;  %v748_v47 = vld [vmem:[%s4899_s2 + $0x710] sm:$0xff]  ;;  %v763_v49 = vld [vmem:[%s4899_s2 + $0x788] sm:$0xff] }
 0x17b   :  { %2624 = vmatprep.subr.mxu1 %v698_v51  ;;  %2718 = vmatpush3.msra.mxu0 %v784_v53  ;;  %v851_v50 = vld [vmem:[%s4899_s2 + $0xa48] sm:$0xff]  ;;  %v866_v53 = vld [vmem:[%s4899_s2 + $0xac0] sm:$0xff] }
 0x17c   :  { %2625 = vmatpush3.msra.mxu1 %v682_v54  ;;  %2719 = vmatprep.subr.mxu0 %v799_v55  ;;  %v747_v51 = vld [vmem:[%s4899_s2 + $0x708] sm:$0xff]  ;;  %v762_v54 = vld [vmem:[%s4899_s2 + $0x780] sm:$0xff] }
 0x17d   :  { %1630 = vmatmul.mubr.f32.vlgmr.msra.gmra.mxu1 %v3894_v6  ;;  %2664 = vmatprep.subr.mxu1 %v777_v56  ;;  %v773_v6 = vld [vmem:[%s4899_s2 + $0x7d8] sm:$0xff]  ;;  %v850_v55 = vld [vmem:[%s4899_s2 + $0xa40] sm:$0xff] }
 0x17e   :  { %2665 = vmatpush3.msra.mxu1 %v761_v57  ;;  %1769 = vmatprep.mubr.f32.mxu1 %v1114_v58  ;;  %v746_v56 = vld [vmem:[%s4899_s2 + $0x700] sm:$0xff]  ;;  %v865_v57 = vld [vmem:[%s4899_s2 + $0xab8] sm:$0xff] }
 0x17f   :  { %2666 = vmatprep.subr.mxu1 %v776_v59  ;;  %2720 = vmatpush3.msra.mxu0 %v783_v60  ;;  %v841_v58 = vld [vmem:[%s4899_s2 + $0x9f8] sm:$0xff] }
 0x180   :  { %2667 = vmatpush3.msra.mxu1 %v760_v24  ;;  %2721 = vmatprep.subr.mxu0 %v798_v61  ;;  %v825_v59 = vld [vmem:[%s4899_s2 + $0x978] sm:$0xff]  ;;  %v840_v24 = vld [vmem:[%s4899_s2 + $0x9f0] sm:$0xff] }
 0x181   :  { %2668 = vmatprep.subr.mxu1 %v775_v62  ;;  %2722 = vmatpush3.msra.mxu0 %v782_v63  ;;  %v849_v60 = vld [vmem:[%s4899_s2 + $0xa38] sm:$0xff]  ;;  %v864_v61 = vld [vmem:[%s4899_s2 + $0xab0] sm:$0xff] }
 0x182   :  { %2669 = vmatpush3.msra.mxu1 %v759_v0  ;;  %2723 = vmatprep.subr.mxu0 %v797_v1  ;;  %v824_v62 = vld [vmem:[%s4899_s2 + $0x970] sm:$0xff]  ;;  %v839_v0 = vld [vmem:[%s4899_s2 + $0x9e8] sm:$0xff] }
 0x183   :  { %2670 = vmatprep.subr.mxu1 %v774_v19  ;;  %2724 = vmatpush3.msra.mxu0 %v781_v3  ;;  %v848_v63 = vld [vmem:[%s4899_s2 + $0xa30] sm:$0xff]  ;;  %v863_v1 = vld [vmem:[%s4899_s2 + $0xaa8] sm:$0xff]  ;;  %v838_v3 = vld [vmem:[%s4899_s2 + $0x9e0] sm:$0xff] }
 0x184   :  { %2671 = vmatpush3.msra.mxu1 %v758_v4  ;;  %2725 = vmatprep.subr.mxu0 %v796_v5  ;;  %v847_v19 = vld [vmem:[%s4899_s2 + $0xa28] sm:$0xff]  ;;  %v862_v4 = vld [vmem:[%s4899_s2 + $0xaa0] sm:$0xff] }
 0x185   :  { %2672 = vmatprep.subr.mxu1 %v773_v6  ;;  %2726 = vmatpush3.msra.mxu0 %v780_v7  ;;  %v822_v5 = vld [vmem:[%s4899_s2 + $0x960] sm:$0xff]  ;;  %v837_v7 = vld [vmem:[%s4899_s2 + $0x9d8] sm:$0xff] }
 0x186   :  { %2673 = vmatpush3.msra.mxu1 %v757_v9  ;;  %2727 = vmatprep.subr.mxu0 %v795_v10  ;;  %v846_v6 = vld [vmem:[%s4899_s2 + $0xa20] sm:$0xff]  ;;  %v4271_v9 = vld [vmem:[#allocation2 + $0x28] sm:$0xff]  ;;  %v821_v10 = vld [vmem:[%s4899_s2 + $0x958] sm:$0xff] }
 0x187   :  { %2674 = vmatprep.subr.mxu1 %v772_v11  ;;  %2728 = vmatpush3.msra.mxu0 %v779_v12  ;;  %v845_v11 = vld [vmem:[%s4899_s2 + $0xa18] sm:$0xff]  ;;  %v836_v12 = vld [vmem:[%s4899_s2 + $0x9d0] sm:$0xff] }
 0x188   :  { %2675 = vmatpush3.msra.mxu1 %v756_v13  ;;  %2729 = vmatprep.subr.mxu0 %v794_v14  ;;  %v860_v13 = vld [vmem:[%s4899_s2 + $0xa90] sm:$0xff] }
 0x189   :  { %2676 = vmatprep.subr.mxu1 %v771_v16  ;;  %2730 = vmatpush3.msra.mxu0 %v778_v17  ;;  %v820_v14 = vld [vmem:[%s4899_s2 + $0x950] sm:$0xff]  ;;  %v1139_v17 = vrot.slane %v4271_v9, %v3433_v15 }
 0x18a   :  { %2677 = vmatpush3.msra.mxu1 %v755_v20  ;;  %1839 = vmatprep.mubr.f32.mxu0 %v1130_v18  ;;  %v844_v16 = vld [vmem:[%s4899_s2 + $0xa10] sm:$0xff]  ;;  %v835_v18 = vld [vmem:[%s4899_s2 + $0x9c8] sm:$0xff] }
 0x18b   :  { %2678 = vmatprep.subr.mxu1 %v770_v21  ;;  %2769 = vmatprep.subr.mxu0 %v873_v22  ;;  %v859_v20 = vld [vmem:[%s4899_s2 + $0xa88] sm:$0xff] }
 0x18c   :  { %2679 = vmatpush3.msra.mxu1 %v754_v25  ;;  %1840 = vmatmul.mubr.f32.vlgmr.msra.gmra.mxu0 %v1122_v8  ;;  %v861_v8 = vld [vmem:[%s4899_s2 + $0xa98] sm:$0xff]  ;;  %v819_v21 = vld [vmem:[%s4899_s2 + $0x948] sm:$0xff]  ;;  %v1115_v25 = vcombine.high %v4065_v2, %v4065_v2  ;;  %v842_v2 = vld [vmem:[%s4899_s2 + $0xa00] sm:$0xff] }
 0x18d   :  { %2680 = vmatprep.subr.mxu1 %v769_v26  ;;  %2770 = vmatpush3.msra.mxu0 %v857_v27  ;;  %v843_v22 = vld [vmem:[%s4899_s2 + $0xa08] sm:$0xff]  ;;  %v834_v26 = vld [vmem:[%s4899_s2 + $0x9c0] sm:$0xff] }
 0x18e   :  { %2681 = vmatpush3.msra.mxu1 %v753_v28  ;;  %2771 = vmatprep.subr.mxu0 %v872_v29  ;;  %v858_v27 = vld [vmem:[%s4899_s2 + $0xa80] sm:$0xff]  ;;  %v1147_v29 = vcombine.high %v1139_v17, %v1139_v17 }
 0x18f   :  { %2682 = vmatprep.subr.mxu1 %v768_v30  ;;  %2772 = vmatpush3.msra.mxu0 %v856_v31  ;;  %v818_v28 = vld [vmem:[%s4899_s2 + $0x940] sm:$0xff]  ;;  %v833_v30 = vld [vmem:[%s4899_s2 + $0x9b8] sm:$0xff] }
 0x190   :  { %2683 = vmatpush3.msra.mxu1 %v752_v32  ;;  %2773 = vmatprep.subr.mxu0 %v871_v33  ;;  %v817_v31 = vld [vmem:[%s4899_s2 + $0x938] sm:$0xff]  ;;  %v4326_v32 = vrot.slane %v1115_v25, %v3433_v15  ;;  %v832_v33 = vld [vmem:[%s4899_s2 + $0x9b0] sm:$0xff]  ;;  %v899_v25 = vld [vmem:[%s4899_s2 + $0xbc8] sm:$0xff] }
 0x191   :  { %2684 = vmatprep.subr.mxu1 %v767_v34  ;;  %2774 = vmatpush3.msra.mxu0 %v855_v35  ;;  %v937_v34 = vld [vmem:[%s4899_s2 + $0xcf8] sm:$0xff]  ;;  %v816_v35 = vld [vmem:[%s4899_s2 + $0x930] sm:$0xff] }
 0x192   :  { %2685 = vmatpush3.msra.mxu1 %v751_v36  ;;  %2775 = vmatprep.subr.mxu0 %v870_v37  ;;  %v921_v36 = vld [vmem:[%s4899_s2 + $0xc78] sm:$0xff]  ;;  %v831_v37 = vld [vmem:[%s4899_s2 + $0x9a8] sm:$0xff] }
 0x193   :  { %2686 = vmatprep.subr.mxu1 %v766_v38  ;;  %2776 = vmatpush3.msra.mxu0 %v854_v39  ;;  %v936_v38 = vld [vmem:[%s4899_s2 + $0xcf0] sm:$0xff]  ;;  %v815_v39 = vld [vmem:[%s4899_s2 + $0x928] sm:$0xff] }
 0x194   :  { %2687 = vmatpush3.msra.mxu1 %v750_v40  ;;  %2777 = vmatprep.subr.mxu0 %v869_v41  ;;  %v920_v40 = vld [vmem:[%s4899_s2 + $0xc70] sm:$0xff]  ;;  %v1131_v41 = vcombine.high %v4326_v32, %v4326_v32 }
 0x195   :  { %2688 = vmatprep.subr.mxu1 %v765_v42  ;;  %2778 = vmatpush3.msra.mxu0 %v853_v43  ;;  %v830_v42 = vld [vmem:[%s4899_s2 + $0x9a0] sm:$0xff] }
 0x196   :  { %2689 = vmatpush3.msra.mxu1 %v749_v23  ;;  %2779 = vmatprep.subr.mxu0 %v868_v44  ;;  %v814_v43 = vld [vmem:[%s4899_s2 + $0x920] sm:$0xff]  ;;  %v935_v23 = vld [vmem:[%s4899_s2 + $0xce8] sm:$0xff]  ;;  %v829_v44 = vld [vmem:[%s4899_s2 + $0x998] sm:$0xff] }
 0x197   :  { %2690 = vmatprep.subr.mxu1 %v764_v45  ;;  %2780 = vmatpush3.msra.mxu0 %v852_v46  ;;  %v919_v45 = vld [vmem:[%s4899_s2 + $0xc68] sm:$0xff]  ;;  %v813_v46 = vld [vmem:[%s4899_s2 + $0x918] sm:$0xff] }
 0x198   :  { %2691 = vmatpush3.msra.mxu1 %v748_v47  ;;  %2781 = vmatprep.subr.mxu0 %v867_v48  ;;  %v934_v47 = vld [vmem:[%s4899_s2 + $0xce0] sm:$0xff]  ;;  %v828_v48 = vld [vmem:[%s4899_s2 + $0x990] sm:$0xff] }
 0x199   :  { %2692 = vmatprep.subr.mxu1 %v763_v49  ;;  %2782 = vmatpush3.msra.mxu0 %v851_v50  ;;  %v918_v49 = vld [vmem:[%s4899_s2 + $0xc60] sm:$0xff]  ;;  %v1132_v50 = vcombine.high %v4271_v9, %v4271_v9 }
 0x19a   :  { %2693 = vmatpush3.msra.mxu1 %v747_v51  ;;  %2783 = vmatprep.subr.mxu0 %v866_v53  ;;  %v812_v51 = vld [vmem:[%s4899_s2 + $0x910] sm:$0xff]  ;;  %v933_v53 = vld [vmem:[%s4899_s2 + $0xcd8] sm:$0xff]  ;;  %v902_v9 = vld [vmem:[%s4899_s2 + $0xbe0] sm:$0xff] }
 0x19b   :  { %2694 = vmatprep.subr.mxu1 %v762_v54  ;;  %2784 = vmatpush3.msra.mxu0 %v850_v55  ;;  %v827_v54 = vld [vmem:[%s4899_s2 + $0x988] sm:$0xff]  ;;  %v917_v55 = vld [vmem:[%s4899_s2 + $0xc58] sm:$0xff] }
 0x19c   :  { %2695 = vmatpush3.msra.mxu1 %v746_v56  ;;  %2785 = vmatprep.subr.mxu0 %v865_v57  ;;  %v811_v56 = vld [vmem:[%s4899_s2 + $0x908] sm:$0xff]  ;;  %v932_v57 = vld [vmem:[%s4899_s2 + $0xcd0] sm:$0xff] }
 0x19d   :  { %1770 = vmatmul.mubr.f32.vlgmr.msra.gmra.mxu1 %v4021_v52  ;;  %2734 = vmatprep.subr.mxu1 %v841_v58  ;;  %v823_v52 = vld [vmem:[%s4899_s2 + $0x968] sm:$0xff]  ;;  %v826_v58 = vld [vmem:[%s4899_s2 + $0x980] sm:$0xff] }
 0x19e   :  { %2735 = vmatpush3.msra.mxu1 %v825_v59  ;;  %2786 = vmatpush3.msra.mxu0 %v849_v60  ;;  %v916_v59 = vld [vmem:[%s4899_s2 + $0xc50] sm:$0xff]  ;;  %v4408_v60 = vrot.slane %v1132_v50, %v3433_v15  ;;  %v893_v50 = vld [vmem:[%s4899_s2 + $0xb98] sm:$0xff] }
 0x19f   :  { %2736 = vmatprep.subr.mxu1 %v840_v24  ;;  %2787 = vmatprep.subr.mxu0 %v864_v61  ;;  %v810_v24 = vld [vmem:[%s4899_s2 + $0x900] sm:$0xff]  ;;  %v931_v61 = vld [vmem:[%s4899_s2 + $0xcc8] sm:$0xff] }
 0x1a0   :  { %2737 = vmatpush3.msra.mxu1 %v824_v62  ;;  %2788 = vmatpush3.msra.mxu0 %v848_v63  ;;  %v905_v62 = vld [vmem:[%s4899_s2 + $0xbf8] sm:$0xff] }
 0x1a1   :  { %2738 = vmatprep.subr.mxu1 %v839_v0  ;;  %2789 = vmatprep.subr.mxu0 %v863_v1  ;;  %v889_v63 = vld [vmem:[%s4899_s2 + $0xb78] sm:$0xff]  ;;  %v1148_v0 = vcombine.high %v4408_v60, %v4408_v60  ;;  %v915_v1 = vld [vmem:[%s4899_s2 + $0xc48] sm:$0xff] }
 0x1a2   :  { %2739 = vmatpush3.msra.mxu1 %v823_v52  ;;  %2790 = vmatpush3.msra.mxu0 %v847_v19  ;;  %v904_v52 = vld [vmem:[%s4899_s2 + $0xbf0] sm:$0xff]  ;;  %v930_v19 = vld [vmem:[%s4899_s2 + $0xcc0] sm:$0xff] }
 0x1a3   :  { %2740 = vmatprep.subr.mxu1 %v838_v3  ;;  %2791 = vmatprep.subr.mxu0 %v862_v4  ;;  %v888_v3 = vld [vmem:[%s4899_s2 + $0xb70] sm:$0xff]  ;;  %v914_v4 = vld [vmem:[%s4899_s2 + $0xc40] sm:$0xff] }
 0x1a4   :  { %2741 = vmatpush3.msra.mxu1 %v822_v5  ;;  %2792 = vmatpush3.msra.mxu0 %v846_v6  ;;  %v903_v5 = vld [vmem:[%s4899_s2 + $0xbe8] sm:$0xff]  ;;  %v929_v6 = vld [vmem:[%s4899_s2 + $0xcb8] sm:$0xff] }
 0x1a5   :  { %2742 = vmatprep.subr.mxu1 %v837_v7  ;;  %2793 = vmatprep.subr.mxu0 %v861_v8  ;;  %v887_v7 = vld [vmem:[%s4899_s2 + $0xb68] sm:$0xff]  ;;  %v913_v8 = vld [vmem:[%s4899_s2 + $0xc38] sm:$0xff] }
 0x1a6   :  { %2743 = vmatpush3.msra.mxu1 %v821_v10  ;;  %2794 = vmatpush3.msra.mxu0 %v845_v11  ;;  %v928_v10 = vld [vmem:[%s4899_s2 + $0xcb0] sm:$0xff]  ;;  %v886_v11 = vld [vmem:[%s4899_s2 + $0xb60] sm:$0xff] }
 0x1a7   :  { %2744 = vmatprep.subr.mxu1 %v836_v12  ;;  %2795 = vmatprep.subr.mxu0 %v860_v13  ;;  %v912_v12 = vld [vmem:[%s4899_s2 + $0xc30] sm:$0xff]  ;;  %v901_v13 = vld [vmem:[%s4899_s2 + $0xbd8] sm:$0xff] }
 0x1a8   :  { %2745 = vmatpush3.msra.mxu1 %v820_v14  ;;  %2796 = vmatpush3.msra.mxu0 %v844_v16  ;;  %v927_v14 = vld [vmem:[%s4899_s2 + $0xca8] sm:$0xff]  ;;  %v885_v16 = vld [vmem:[%s4899_s2 + $0xb58] sm:$0xff] }
 0x1a9   :  { %2746 = vmatprep.subr.mxu1 %v835_v18  ;;  %2797 = vmatprep.subr.mxu0 %v859_v20  ;;  %v900_v18 = vld [vmem:[%s4899_s2 + $0xbd0] sm:$0xff]  ;;  %v926_v20 = vld [vmem:[%s4899_s2 + $0xca0] sm:$0xff] }
 0x1aa   :  { %2747 = vmatpush3.msra.mxu1 %v819_v21  ;;  %2798 = vmatpush3.msra.mxu0 %v843_v22  ;;  %v884_v21 = vld [vmem:[%s4899_s2 + $0xb50] sm:$0xff]  ;;  %v910_v22 = vld [vmem:[%s4899_s2 + $0xc20] sm:$0xff] }
 0x1ab   :  { %2748 = vmatprep.subr.mxu1 %v834_v26  ;;  %2799 = vmatprep.subr.mxu0 %v858_v27  ;;  %v925_v26 = vld [vmem:[%s4899_s2 + $0xc98] sm:$0xff]  ;;  %v883_v27 = vld [vmem:[%s4899_s2 + $0xb48] sm:$0xff] }
 0x1ac   :  { %2749 = vmatpush3.msra.mxu1 %v818_v28  ;;  %2800 = vmatpush3.msra.mxu0 %v842_v2  ;;  %v4497_v28 = vld [vmem:[#allocation2 + $0x30] sm:$0xff]  ;;  %v909_v2 = vld [vmem:[%s4899_s2 + $0xc18] sm:$0xff] }
 0x1ad   :  { %2750 = vmatprep.subr.mxu1 %v833_v30  ;;  %1979 = vmatprep.mubr.f32.mxu0 %v1147_v29  ;;  %v898_v29 = vld [vmem:[%s4899_s2 + $0xbc0] sm:$0xff]  ;;  %v924_v30 = vld [vmem:[%s4899_s2 + $0xc90] sm:$0xff] }
 0x1ae   :  { %2751 = vmatpush3.msra.mxu1 %v817_v31  ;;  %1980 = vmatmul.mubr.f32.vlgmr.msra.gmra.mxu0 %v1139_v17  ;;  %v911_v17 = vld [vmem:[%s4899_s2 + $0xc28] sm:$0xff]  ;;  %v882_v31 = vld [vmem:[%s4899_s2 + $0xb40] sm:$0xff] }
 0x1af   :  { %2752 = vmatprep.subr.mxu1 %v832_v33  ;;  %2839 = vmatprep.subr.mxu0 %v937_v34  ;;  %v897_v33 = vld [vmem:[%s4899_s2 + $0xbb8] sm:$0xff]  ;;  %v1156_v34 = vrot.slane %v4497_v28, %v3433_v15 }
 0x1b0   :  { %2753 = vmatpush3.msra.mxu1 %v816_v35  ;;  %2840 = vmatpush3.msra.mxu0 %v921_v36  ;;  %v923_v35 = vld [vmem:[%s4899_s2 + $0xc88] sm:$0xff]  ;;  %v881_v36 = vld [vmem:[%s4899_s2 + $0xb38] sm:$0xff] }
 0x1b1   :  { %2754 = vmatprep.subr.mxu1 %v831_v37  ;;  %2841 = vmatprep.subr.mxu0 %v936_v38  ;;  %v907_v37 = vld [vmem:[%s4899_s2 + $0xc08] sm:$0xff]  ;;  %v896_v38 = vld [vmem:[%s4899_s2 + $0xbb0] sm:$0xff] }
 0x1b2   :  { %2755 = vmatpush3.msra.mxu1 %v815_v39  ;;  %2842 = vmatpush3.msra.mxu0 %v920_v40  ;;  %v922_v39 = vld [vmem:[%s4899_s2 + $0xc80] sm:$0xff]  ;;  %v880_v40 = vld [vmem:[%s4899_s2 + $0xb30] sm:$0xff] }
 0x1b3   :  { %2756 = vmatprep.subr.mxu1 %v830_v42  ;;  %1909 = vmatprep.mubr.f32.mxu1 %v1131_v41  ;;  %v906_v41 = vld [vmem:[%s4899_s2 + $0xc00] sm:$0xff]  ;;  %v895_v42 = vld [vmem:[%s4899_s2 + $0xba8] sm:$0xff] }
 0x1b4   :  { %2757 = vmatpush3.msra.mxu1 %v814_v43  ;;  %2843 = vmatprep.subr.mxu0 %v935_v23  ;;  %v1164_v43 = vcombine.high %v1156_v34, %v1156_v34  ;;  %v1001_v23 = vld [vmem:[%s4899_s2 + $0xef8] sm:$0xff] }
 0x1b5   :  { %2758 = vmatprep.subr.mxu1 %v829_v44  ;;  %2844 = vmatpush3.msra.mxu0 %v919_v45  ;;  %v879_v44 = vld [vmem:[%s4899_s2 + $0xb28] sm:$0xff]  ;;  %v985_v45 = vld [vmem:[%s4899_s2 + $0xe78] sm:$0xff] }
 0x1b6   :  { %2759 = vmatpush3.msra.mxu1 %v813_v46  ;;  %2845 = vmatprep.subr.mxu0 %v934_v47  ;;  %v894_v46 = vld [vmem:[%s4899_s2 + $0xba0] sm:$0xff]  ;;  %v1000_v47 = vld [vmem:[%s4899_s2 + $0xef0] sm:$0xff] }
 0x1b7   :  { %2760 = vmatprep.subr.mxu1 %v828_v48  ;;  %2846 = vmatpush3.msra.mxu0 %v918_v49  ;;  %v878_v48 = vld [vmem:[%s4899_s2 + $0xb20] sm:$0xff]  ;;  %v984_v49 = vld [vmem:[%s4899_s2 + $0xe70] sm:$0xff] }
 0x1b8   :  { %2761 = vmatpush3.msra.mxu1 %v812_v51  ;;  %2847 = vmatprep.subr.mxu0 %v933_v53  ;;  %v999_v51 = vld [vmem:[%s4899_s2 + $0xee8] sm:$0xff]  ;;  %v877_v53 = vld [vmem:[%s4899_s2 + $0xb18] sm:$0xff] }
 0x1b9   :  { %2762 = vmatprep.subr.mxu1 %v827_v54  ;;  %2848 = vmatpush3.msra.mxu0 %v917_v55  ;;  %v983_v54 = vld [vmem:[%s4899_s2 + $0xe68] sm:$0xff]  ;;  %v892_v55 = vld [vmem:[%s4899_s2 + $0xb90] sm:$0xff] }
 0x1ba   :  { %2763 = vmatpush3.msra.mxu1 %v811_v56  ;;  %2849 = vmatprep.subr.mxu0 %v932_v57  ;;  %v998_v56 = vld [vmem:[%s4899_s2 + $0xee0] sm:$0xff]  ;;  %v876_v57 = vld [vmem:[%s4899_s2 + $0xb10] sm:$0xff] }
 0x1bb   :  { %2764 = vmatprep.subr.mxu1 %v826_v58  ;;  %2850 = vmatpush3.msra.mxu0 %v916_v59  ;;  %v982_v58 = vld [vmem:[%s4899_s2 + $0xe60] sm:$0xff]  ;;  %v891_v59 = vld [vmem:[%s4899_s2 + $0xb88] sm:$0xff] }
 0x1bc   :  { %2765 = vmatpush3.msra.mxu1 %v810_v24  ;;  %2851 = vmatprep.subr.mxu0 %v931_v61  ;;  %v997_v24 = vld [vmem:[%s4899_s2 + $0xed8] sm:$0xff]  ;;  %v875_v61 = vld [vmem:[%s4899_s2 + $0xb08] sm:$0xff] }
 0x1bd   :  { %1910 = vmatmul.mubr.f32.vlgmr.msra.gmra.mxu1 %v4326_v32  ;;  %2804 = vmatprep.subr.mxu1 %v905_v62  ;;  %v908_v32 = vld [vmem:[%s4899_s2 + $0xc10] sm:$0xff]  ;;  %v981_v62 = vld [vmem:[%s4899_s2 + $0xe58] sm:$0xff] }
 0x1be   :  { %2805 = vmatpush3.msra.mxu1 %v889_v63  ;;  %2049 = vmatprep.mubr.f32.mxu1 %v1148_v0  ;;  %v890_v63 = vld [vmem:[%s4899_s2 + $0xb80] sm:$0xff]  ;;  %v996_v0 = vld [vmem:[%s4899_s2 + $0xed0] sm:$0xff] }
 0x1bf   :  { %2852 = vmatpush3.msra.mxu0 %v915_v1  ;;  %2806 = vmatprep.subr.mxu1 %v904_v52  ;;  %v874_v1 = vld [vmem:[%s4899_s2 + $0xb00] sm:$0xff]  ;;  %v980_v52 = vld [vmem:[%s4899_s2 + $0xe50] sm:$0xff] }
 0x1c0   :  { %2853 = vmatprep.subr.mxu0 %v930_v19  ;;  %2807 = vmatpush3.msra.mxu1 %v888_v3  ;;  %v969_v19 = vld [vmem:[%s4899_s2 + $0xdf8] sm:$0xff]  ;;  %v995_v3 = vld [vmem:[%s4899_s2 + $0xec8] sm:$0xff] }
 0x1c1   :  { %2854 = vmatpush3.msra.mxu0 %v914_v4  ;;  %2808 = vmatprep.subr.mxu1 %v903_v5  ;;  %v953_v4 = vld [vmem:[%s4899_s2 + $0xd78] sm:$0xff]  ;;  %v979_v5 = vld [vmem:[%s4899_s2 + $0xe48] sm:$0xff] }
 0x1c2   :  { %2855 = vmatprep.subr.mxu0 %v929_v6  ;;  %2809 = vmatpush3.msra.mxu1 %v887_v7  ;;  %v968_v6 = vld [vmem:[%s4899_s2 + $0xdf0] sm:$0xff]  ;;  %v994_v7 = vld [vmem:[%s4899_s2 + $0xec0] sm:$0xff] }
 0x1c3   :  { %2856 = vmatpush3.msra.mxu0 %v913_v8  ;;  %2810 = vmatprep.subr.mxu1 %v902_v9  ;;  %v952_v8 = vld [vmem:[%s4899_s2 + $0xd70] sm:$0xff]  ;;  %v978_v9 = vld [vmem:[%s4899_s2 + $0xe40] sm:$0xff] }
 0x1c4   :  { %2857 = vmatprep.subr.mxu0 %v928_v10  ;;  %2811 = vmatpush3.msra.mxu1 %v886_v11  ;;  %v993_v10 = vld [vmem:[%s4899_s2 + $0xeb8] sm:$0xff]  ;;  %v951_v11 = vld [vmem:[%s4899_s2 + $0xd68] sm:$0xff] }
 0x1c5   :  { %2858 = vmatpush3.msra.mxu0 %v912_v12  ;;  %2812 = vmatprep.subr.mxu1 %v901_v13  ;;  %v977_v12 = vld [vmem:[%s4899_s2 + $0xe38] sm:$0xff]  ;;  %v966_v13 = vld [vmem:[%s4899_s2 + $0xde0] sm:$0xff] }
 0x1c6   :  { %2859 = vmatprep.subr.mxu0 %v927_v14  ;;  %2813 = vmatpush3.msra.mxu1 %v885_v16  ;;  %v992_v14 = vld [vmem:[%s4899_s2 + $0xeb0] sm:$0xff]  ;;  %v950_v16 = vld [vmem:[%s4899_s2 + $0xd60] sm:$0xff] }
 0x1c7   :  { %2860 = vmatpush3.msra.mxu0 %v911_v17  ;;  %2814 = vmatprep.subr.mxu1 %v900_v18  ;;  %v976_v17 = vld [vmem:[%s4899_s2 + $0xe30] sm:$0xff]  ;;  %v965_v18 = vld [vmem:[%s4899_s2 + $0xdd8] sm:$0xff] }
 0x1c8   :  { %2861 = vmatprep.subr.mxu0 %v926_v20  ;;  %2815 = vmatpush3.msra.mxu1 %v884_v21  ;;  %v991_v20 = vld [vmem:[%s4899_s2 + $0xea8] sm:$0xff]  ;;  %v949_v21 = vld [vmem:[%s4899_s2 + $0xd58] sm:$0xff] }
 0x1c9   :  { %2862 = vmatpush3.msra.mxu0 %v910_v22  ;;  %2816 = vmatprep.subr.mxu1 %v899_v25  ;;  %v975_v22 = vld [vmem:[%s4899_s2 + $0xe28] sm:$0xff]  ;;  %v964_v25 = vld [vmem:[%s4899_s2 + $0xdd0] sm:$0xff] }
 0x1ca   :  { %2863 = vmatprep.subr.mxu0 %v925_v26  ;;  %2817 = vmatpush3.msra.mxu1 %v883_v27  ;;  %v990_v26 = vld [vmem:[%s4899_s2 + $0xea0] sm:$0xff]  ;;  %v948_v27 = vld [vmem:[%s4899_s2 + $0xd50] sm:$0xff] }
 0x1cb   :  { %2864 = vmatpush3.msra.mxu0 %v909_v2  ;;  %2818 = vmatprep.subr.mxu1 %v898_v29  ;;  %v974_v2 = vld [vmem:[%s4899_s2 + $0xe20] sm:$0xff]  ;;  %v963_v29 = vld [vmem:[%s4899_s2 + $0xdc8] sm:$0xff] }
 0x1cc   :  { %2865 = vmatprep.subr.mxu0 %v924_v30  ;;  %2819 = vmatpush3.msra.mxu1 %v882_v31  ;;  %v989_v30 = vld [vmem:[%s4899_s2 + $0xe98] sm:$0xff] }
 0x1cd   :  { %2866 = vmatpush3.msra.mxu0 %v908_v32  ;;  %2820 = vmatprep.subr.mxu1 %v897_v33  ;;  %v4691_v31 = vld [vmem:[#allocation2 + $0x38] sm:$0xff]  ;;  %v947_v32 = vld [vmem:[%s4899_s2 + $0xd48] sm:$0xff] }
 0x1ce   :  { %2867 = vmatprep.subr.mxu0 %v923_v35  ;;  %2821 = vmatpush3.msra.mxu1 %v881_v36  ;;  %v973_v33 = vld [vmem:[%s4899_s2 + $0xe18] sm:$0xff]  ;;  %v962_v35 = vld [vmem:[%s4899_s2 + $0xdc0] sm:$0xff]  ;;  %v988_v36 = vld [vmem:[%s4899_s2 + $0xe90] sm:$0xff] }
 0x1cf   :  { %2868 = vmatpush3.msra.mxu0 %v907_v37  ;;  %2822 = vmatprep.subr.mxu1 %v896_v38  ;;  %v946_v37 = vld [vmem:[%s4899_s2 + $0xd40] sm:$0xff]  ;;  %v1173_v38 = vrot.slane %v4691_v31, %v3433_v15 }
 0x1d0   :  { %2869 = vmatprep.subr.mxu0 %v922_v39  ;;  %2823 = vmatpush3.msra.mxu1 %v880_v40  ;;  %v961_v39 = vld [vmem:[%s4899_s2 + $0xdb8] sm:$0xff]  ;;  %v987_v40 = vld [vmem:[%s4899_s2 + $0xe88] sm:$0xff] }
 0x1d1   :  { %2870 = vmatpush3.msra.mxu0 %v906_v41  ;;  %2824 = vmatprep.subr.mxu1 %v895_v42  ;;  %v945_v41 = vld [vmem:[%s4899_s2 + $0xd38] sm:$0xff]  ;;  %v971_v42 = vld [vmem:[%s4899_s2 + $0xe08] sm:$0xff] }
 0x1d2   :  { %2119 = vmatprep.mubr.f32.mxu0 %v1164_v43  ;;  %2909 = vmatprep.subr.mxu0 %v1001_v23  ;;  %v960_v23 = vld [vmem:[%s4899_s2 + $0xdb0] sm:$0xff] }
 0x1d3   :  { %2825 = vmatpush3.msra.mxu1 %v879_v44  ;;  %2120 = vmatmul.mubr.f32.vlgmr.msra.gmra.mxu0 %v1156_v34  ;;  %v1149_v34 = vcombine.high %v4497_v28, %v4497_v28  ;;  %v972_v28 = vld [vmem:[%s4899_s2 + $0xe10] sm:$0xff]  ;;  %v986_v44 = vld [vmem:[%s4899_s2 + $0xe80] sm:$0xff] }
 0x1d4   :  { %2910 = vmatpush3.msra.mxu0 %v985_v45  ;;  %2826 = vmatprep.subr.mxu1 %v894_v46  ;;  %v944_v45 = vld [vmem:[%s4899_s2 + $0xd30] sm:$0xff]  ;;  %v970_v46 = vld [vmem:[%s4899_s2 + $0xe00] sm:$0xff] }
 0x1d5   :  { %2911 = vmatprep.subr.mxu0 %v1000_v47  ;;  %2827 = vmatpush3.msra.mxu1 %v878_v48  ;;  %v1163_v43 = vrot.slane %v1149_v34, %v3433_v15  ;;  %v1181_v47 = vcombine.high %v1173_v38, %v1173_v38  ;;  %v959_v48 = vld [vmem:[%s4899_s2 + $0xda8] sm:$0xff]  ;;  %v1002_v34 = vld [vmem:[%s4899_s2 + $0xf00] sm:$0xff] }
 0x1d6   :  { %2912 = vmatpush3.msra.mxu0 %v984_v49  ;;  %2828 = vmatprep.subr.mxu1 %v893_v50  ;;  %v943_v49 = vld [vmem:[%s4899_s2 + $0xd28] sm:$0xff] }
 0x1d7   :  { %2913 = vmatprep.subr.mxu0 %v999_v51  ;;  %2829 = vmatpush3.msra.mxu1 %v877_v53  ;;  %v1165_v50 = vcombine.high %v1163_v43, %v1163_v43  ;;  %v958_v51 = vld [vmem:[%s4899_s2 + $0xda0] sm:$0xff] }
 0x1d8   :  { %2914 = vmatpush3.msra.mxu0 %v983_v54  ;;  %2830 = vmatprep.subr.mxu1 %v892_v55  ;;  %v942_v53 = vld [vmem:[%s4899_s2 + $0xd20] sm:$0xff]  ;;  %v957_v55 = vld [vmem:[%s4899_s2 + $0xd98] sm:$0xff] }
 0x1d9   :  { %2915 = vmatprep.subr.mxu0 %v998_v56  ;;  %2831 = vmatpush3.msra.mxu1 %v876_v57  ;;  %v4755_v54 = vld [vmem:[%s4900_s3 + $0x1] ss:$0 sm:$0xff]  ;;  %v941_v56 = vld [vmem:[%s4899_s2 + $0xd18] sm:$0xff]  ;;  %v956_v57 = vld [vmem:[%s4899_s2 + $0xd90] sm:$0xff] }
 0x1da   :  { %2916 = vmatpush3.msra.mxu0 %v982_v58  ;;  %2832 = vmatprep.subr.mxu1 %v891_v59  ;;  %v1166_v58 = vcombine.high %v4691_v31, %v4691_v31  ;;  %v940_v59 = vld [vmem:[%s4899_s2 + $0xd10] sm:$0xff]  ;;  %v1019_v31 = vld [vmem:[%s4899_s2 + $0xf88] sm:$0xff] }
 0x1db   :  { %2917 = vmatprep.subr.mxu0 %v997_v24  ;;  %2833 = vmatpush3.msra.mxu1 %v875_v61  ;;  %v955_v24 = vld [vmem:[%s4899_s2 + $0xd88] sm:$0xff] }
 0x1dc   :  { %2918 = vmatpush3.msra.mxu0 %v981_v62  ;;  %2834 = vmatprep.subr.mxu1 %v890_v63  ;;  %v939_v61 = vld [vmem:[%s4899_s2 + $0xd08] sm:$0xff]  ;;  %v954_v62 = vld [vmem:[%s4899_s2 + $0xd80] sm:$0xff]  ;;  %v4782_v63 = vrot.slane %v1166_v58, %v3433_v15 }
 0x1dd   :  { %2919 = vmatprep.subr.mxu0 %v996_v0  ;;  %2835 = vmatpush3.msra.mxu1 %v874_v1  ;;  %v938_v0 = vld [vmem:[%s4899_s2 + $0xd00] sm:$0xff]  ;;  %v1033_v1 = vld [vmem:[%s4899_s2 + $0xff8] sm:$0xff] }
 0x1de   :  { %2920 = vmatpush3.msra.mxu0 %v980_v52  ;;  %2050 = vmatmul.mubr.f32.vlgmr.msra.gmra.mxu1 %v4408_v60  ;;  %v967_v60 = vld [vmem:[%s4899_s2 + $0xde8] sm:$0xff]  ;;  %v1017_v52 = vld [vmem:[%s4899_s2 + $0xf78] sm:$0xff]  ;;  %v1182_v15 = vcombine.high %v4782_v63, %v4782_v63 }
 0x1df   :  { %2874 = vmatprep.subr.mxu1 %v969_v19  ;;  %2921 = vmatprep.subr.mxu0 %v995_v3  ;;  %v1032_v19 = vld [vmem:[%s4899_s2 + $0xff0] sm:$0xff] }
 0x1e0   :  { %2875 = vmatpush3.msra.mxu1 %v953_v4  ;;  %2922 = vmatpush3.msra.mxu0 %v979_v5  ;;  %v1016_v3 = vld [vmem:[%s4899_s2 + $0xf70] sm:$0xff]  ;;  %v1031_v4 = vld [vmem:[%s4899_s2 + $0xfe8] sm:$0xff] }
 0x1e1   :  { %2876 = vmatprep.subr.mxu1 %v968_v6  ;;  %2923 = vmatprep.subr.mxu0 %v994_v7  ;;  %v1015_v5 = vld [vmem:[%s4899_s2 + $0xf68] sm:$0xff]  ;;  %v1030_v6 = vld [vmem:[%s4899_s2 + $0xfe0] sm:$0xff] }
 0x1e2   :  { %2877 = vmatpush3.msra.mxu1 %v952_v8  ;;  %2924 = vmatpush3.msra.mxu0 %v978_v9  ;;  %v1014_v7 = vld [vmem:[%s4899_s2 + $0xf60] sm:$0xff]  ;;  %v1029_v8 = vld [vmem:[%s4899_s2 + $0xfd8] sm:$0xff] }
 0x1e3   :  { %2878 = vmatprep.subr.mxu1 %v967_v60  ;;  %2925 = vmatprep.subr.mxu0 %v993_v10  ;;  %v1013_v9 = vld [vmem:[%s4899_s2 + $0xf58] sm:$0xff]  ;;  %v1028_v60 = vld [vmem:[%s4899_s2 + $0xfd0] sm:$0xff] }
 0x1e4   :  { %2879 = vmatpush3.msra.mxu1 %v951_v11  ;;  %2926 = vmatpush3.msra.mxu0 %v977_v12  ;;  %v1012_v10 = vld [vmem:[%s4899_s2 + $0xf50] sm:$0xff]  ;;  %v1027_v11 = vld [vmem:[%s4899_s2 + $0xfc8] sm:$0xff] }
 0x1e5   :  { %2880 = vmatprep.subr.mxu1 %v966_v13  ;;  %2927 = vmatprep.subr.mxu0 %v992_v14  ;;  %v1011_v12 = vld [vmem:[%s4899_s2 + $0xf48] sm:$0xff]  ;;  %v1026_v13 = vld [vmem:[%s4899_s2 + $0xfc0] sm:$0xff] }
 0x1e6   :  { %2881 = vmatpush3.msra.mxu1 %v950_v16  ;;  %2928 = vmatpush3.msra.mxu0 %v976_v17  ;;  %v1010_v14 = vld [vmem:[%s4899_s2 + $0xf40] sm:$0xff]  ;;  %v1025_v16 = vld [vmem:[%s4899_s2 + $0xfb8] sm:$0xff] }
 0x1e7   :  { %2882 = vmatprep.subr.mxu1 %v965_v18  ;;  %2929 = vmatprep.subr.mxu0 %v991_v20  ;;  %v1009_v17 = vld [vmem:[%s4899_s2 + $0xf38] sm:$0xff]  ;;  %v1024_v18 = vld [vmem:[%s4899_s2 + $0xfb0] sm:$0xff] }
 0x1e8   :  { %2883 = vmatpush3.msra.mxu1 %v949_v21  ;;  %2930 = vmatpush3.msra.mxu0 %v975_v22  ;;  %v1008_v20 = vld [vmem:[%s4899_s2 + $0xf30] sm:$0xff]  ;;  %v1023_v21 = vld [vmem:[%s4899_s2 + $0xfa8] sm:$0xff] }
 0x1e9   :  { %2884 = vmatprep.subr.mxu1 %v964_v25  ;;  %2931 = vmatprep.subr.mxu0 %v990_v26  ;;  %v1007_v22 = vld [vmem:[%s4899_s2 + $0xf28] sm:$0xff]  ;;  %v1022_v25 = vld [vmem:[%s4899_s2 + $0xfa0] sm:$0xff] }
 0x1ea   :  { %2885 = vmatpush3.msra.mxu1 %v948_v27  ;;  %2932 = vmatpush3.msra.mxu0 %v974_v2  ;;  %v1006_v26 = vld [vmem:[%s4899_s2 + $0xf20] sm:$0xff]  ;;  %v1021_v27 = vld [vmem:[%s4899_s2 + $0xf98] sm:$0xff] }
 0x1eb   :  { %2886 = vmatprep.subr.mxu1 %v963_v29  ;;  %2933 = vmatprep.subr.mxu0 %v989_v30  ;;  %v1005_v2 = vld [vmem:[%s4899_s2 + $0xf18] sm:$0xff]  ;;  %v1020_v29 = vld [vmem:[%s4899_s2 + $0xf90] sm:$0xff] }
 0x1ec   :  { %2887 = vmatpush3.msra.mxu1 %v947_v32  ;;  %2934 = vmatpush3.msra.mxu0 %v973_v33  ;;  %v1004_v30 = vld [vmem:[%s4899_s2 + $0xf10] sm:$0xff]  ;;  %v1003_v32 = vld [vmem:[%s4899_s2 + $0xf08] sm:$0xff]  ;;  %v1018_v33 = vld [vmem:[%s4899_s2 + $0xf80] sm:$0xff] }
 0x1ed   :  { %2888 = vmatprep.subr.mxu1 %v962_v35  ;;  %2935 = vmatprep.subr.mxu0 %v988_v36  ;;  %v2348_v35 = vld [vmem:[%s4900_s3 + $0x2] sm:$0x3] }
 0x1ee   :  { %2889 = vmatpush3.msra.mxu1 %v946_v37  ;;  %2936 = vmatpush3.msra.mxu0 %v972_v28 }
 0x1ef   :  { %2890 = vmatprep.subr.mxu1 %v961_v39  ;;  %2937 = vmatprep.subr.mxu0 %v987_v40 }
 0x1f0   :  { %2891 = vmatpush3.msra.mxu1 %v945_v41  ;;  %2938 = vmatpush3.msra.mxu0 %v971_v42  ;;  %v2521_v41 = vpop.f32.mrf.mxu0 }
 0x1f1   :  { %2892 = vmatprep.subr.mxu1 %v960_v23  ;;  %2939 = vmatprep.subr.mxu0 %v986_v44  ;;  %v2416_v23 = vld [vmem:[%s4900_s3] ss:$0 sm:$0xff]  ;;  %s2993_s3 = smov 62  }
 0x1f2   :  { %2893 = vmatpush3.msra.mxu1 %v944_v45  ;;  %2940 = vmatpush3.msra.mxu0 %v970_v46  ;;  %v2522_v46 = vpop.f32.mrf.mxu0 }
 0x1f3   :  { %2259 = vmatprep.mubr.f32.mxu0 %v1181_v47  ;;  %2894 = vmatprep.subr.mxu1 %v959_v48 }
 0x1f4   :  { %2260 = vmatmul.mubr.f32.vlgmr.msra.gmra.mxu0 %v1173_v38  ;;  %2895 = vmatpush3.msra.mxu1 %v943_v49  ;;  %v2451_v38 = vpop.f32.mrf.mxu1 }
 0x1f5   :  { %2896 = vmatprep.subr.mxu1 %v958_v51  ;;  %2189 = vmatprep.mubr.f32.mxu1 %v1165_v50 }
 0x1f6   :  { %2897 = vmatpush3.msra.mxu1 %v942_v53  ;;  %2350 = vrot.lane.b32.xlu0 %v4755_v54, %s2992_s30  ;;  %v2452_v39 = vpop.f32.mrf.mxu1  ;;  %v2523_v53 = vadd.f32 %v2522_v46, %v2521_v41 }
 0x1f7   :  { %2898 = vmatprep.subr.mxu1 %v957_v55 }
 0x1f8   :  { %2899 = vmatpush3.msra.mxu1 %v941_v56 }
 0x1f9   :  { %2900 = vmatprep.subr.mxu1 %v956_v57 }
 0x1fa   :  { %2901 = vmatpush3.msra.mxu1 %v940_v59 }
 0x1fb   :  { %2902 = vmatprep.subr.mxu1 %v955_v24 }
 0x1fc   :  { %2903 = vmatpush3.msra.mxu1 %v939_v61 }
 0x1fd   :  { %2904 = vmatprep.subr.mxu1 %v954_v62  ;;  %v2486_v40 = vpop.f32.mrf.mxu1 }
 0x1fe   :  { %2905 = vmatpush3.msra.mxu1 %v938_v0 }
 0x1ff   :  { %2190 = vmatmul.mubr.f32.vlgmr.msra.gmra.mxu1 %v1163_v43  ;;  %2944 = vmatprep.subr.mxu1 %v1033_v1  ;;  %v2487_v42 = vpop.f32.mrf.mxu1  ;;  %v2453_v43 = vadd.f32 %v2452_v39, %v2451_v38 }
 0x200   :  { %2945 = vmatpush3.msra.mxu1 %v1017_v52  ;;  %2329 = vmatprep.mubr.f32.mxu1 %v1182_v15  ;;  %v2488_v45 = vadd.f32 %v2487_v42, %v2486_v40 }
 0x201   :  { %2946 = vmatprep.subr.mxu1 %v1032_v19  ;;  %v1282_v47 = vadd.f32 %v2453_v43, %v2416_v23 }
 0x202   :  { %2947 = vmatpush3.msra.mxu1 %v1016_v3 }
 0x203   :  { %2948 = vmatprep.subr.mxu1 %v1031_v4  ;;  %v1352_v50 = vadd.f32 %v2488_v45, %v1282_v47 }
 0x204   :  { %2949 = vmatpush3.msra.mxu1 %v1015_v5  ;;  %v2591_v49 = vpop.f32.mrf.mxu0 }
 0x205   :  { %2950 = vmatprep.subr.mxu1 %v1030_v6  ;;  %v1422_v57 = vadd.f32 %v2523_v53, %v1352_v50 }
 0x206   :  { %2951 = vmatpush3.msra.mxu1 %v1014_v7  ;;  %v2592_v56 = vpop.f32.mrf.mxu0 }
 0x207   :  { %2952 = vmatprep.subr.mxu1 %v1029_v8  ;;  %v2593_v61 = vadd.f32 %v2592_v56, %v2591_v49 }
 0x208   :  { %2953 = vmatpush3.msra.mxu1 %v1013_v9 }
 0x209   :  { %2954 = vmatprep.subr.mxu1 %v1028_v60 }
 0x20a   :  { %2955 = vmatpush3.msra.mxu1 %v1012_v10 }
 0x20b   :  { %2956 = vmatprep.subr.mxu1 %v1027_v11 }
 0x20c   :  { %2957 = vmatpush3.msra.mxu1 %v1011_v12 }
 0x20d   :  { %2958 = vmatprep.subr.mxu1 %v1026_v13 }
 0x20e   :  { %2959 = vmatpush3.msra.mxu1 %v1010_v14 }
 0x20f   :  { %2960 = vmatprep.subr.mxu1 %v1025_v16 }
 0x210   :  { %2961 = vmatpush3.msra.mxu1 %v1009_v17 }
 0x211   :  { %2962 = vmatprep.subr.mxu1 %v1024_v18 }
 0x212   :  { %2963 = vmatpush3.msra.mxu1 %v1008_v20 }
 0x213   :  { %2964 = vmatprep.subr.mxu1 %v1023_v21 }
 0x214   :  { %2965 = vmatpush3.msra.mxu1 %v1007_v22 }
 0x215   :  { %2966 = vmatprep.subr.mxu1 %v1022_v25 }
 0x216   :  { %2967 = vmatpush3.msra.mxu1 %v1006_v26 }
 0x217   :  { %2968 = vmatprep.subr.mxu1 %v1021_v27 }
 0x218   :  { %2969 = vmatpush3.msra.mxu1 %v1005_v2 }
 0x219   :  { %2970 = vmatprep.subr.mxu1 %v1020_v29 }
 0x21a   :  { %2971 = vmatpush3.msra.mxu1 %v1004_v30 }
 0x21b   :  { %2972 = vmatprep.subr.mxu1 %v1019_v31 }
 0x21c   :  { %2973 = vmatpush3.msra.mxu1 %v1003_v32 }
 0x21d   :  { %2974 = vmatprep.subr.mxu1 %v1018_v33  ;;  %v2556_v44 = vpop.f32.mrf.mxu1 }
 0x21e   :  { %2975 = vmatpush3.msra.mxu1 %v1002_v34 }
 0x21f   :  { %2330 = vmatmul.mubr.f32.vlgmr.msra.gmra.mxu1 %v4782_v63  ;;  %v2557_v48 = vpop.f32.mrf.mxu1 }
 0x220   :  { %v2558_v55 = vadd.f32 %v2557_v48, %v2556_v44 }
 0x222   :  { %v1492_v24 = vadd.f32 %v2558_v55, %v1422_v57 }
 0x224   :  { %v1562_v1 = vadd.f32 %v2593_v61, %v1492_v24 }
 0x226   :  { %v2661_v58 = vpop.f32.mrf.mxu0 }
 0x228   :  { %v2662_v0 = vpop.f32.mrf.mxu0 }
 0x229   :  { %v2663_v4 = vadd.f32 %v2662_v0, %v2661_v58 }
 0x23d   :  { %v2626_v51 = vpop.f32.mrf.mxu1 }
 0x23f   :  { %v2627_v59 = vpop.f32.mrf.mxu1 }
 0x240   :  { %v2628_v63 = vadd.f32 %v2627_v59, %v2626_v51 }
 0x242   :  { %v1632_v19 = vadd.f32 %v2628_v63, %v1562_v1 }
 0x244   :  { %v1702_v7 = vadd.f32 %v2663_v4, %v1632_v19 }
 0x24c   :  { %v2731_v15 = vpop.f32.mrf.mxu0 }
 0x24e   :  { %v2732_v6 = vpop.f32.mrf.mxu0 }
 0x24f   :  { %v2733_v10 = vadd.f32 %v2732_v6, %v2731_v15 }
 0x25d   :  { %v2696_v62 = vpop.f32.mrf.mxu1 }
 0x25f   :  { %v2697_v52 = vpop.f32.mrf.mxu1 }
 0x260   :  { %v2698_v5 = vadd.f32 %v2697_v52, %v2696_v62 }
 0x262   :  { %v1772_v60 = vadd.f32 %v2698_v5, %v1702_v7 }
 0x264   :  { %v1842_v14 = vadd.f32 %v2733_v10, %v1772_v60 }
 0x268   :  { %v2351_v36 = vpop.permute.xlu0 %2350 }
 0x269   :  { %v2353_v37 = vmul.f32 %v2351_v36, %v2348_v35 }
 0x26b   :  { %v2355_v28 = vsel %vm2354_vm0, %v2353_v37, 0.0 }
 0x26c   :  { %2356 = vadd.xlane.f32.xlu1 %v2355_v28 }
 0x26e   :  { %v2801_v8 = vpop.f32.mrf.mxu0 }
 0x270   :  { %v2802_v13 = vpop.f32.mrf.mxu0 }
 0x271   :  { %v2803_v21 = vadd.f32 %v2802_v13, %v2801_v8 }
 0x27d   :  { %v2766_v3 = vpop.f32.mrf.mxu1 }
 0x27f   :  { %v2767_v9 = vpop.f32.mrf.mxu1 }
 0x280   :  { %v2768_v12 = vadd.f32 %v2767_v9, %v2766_v3 }
 0x282   :  { %v1912_v18 = vadd.f32 %v2768_v12, %v1842_v14 }
 0x284   :  { %v1982_v26 = vadd.f32 %v2803_v21, %v1912_v18 }
 0x293   :  { %v2871_v17 = vpop.f32.mrf.mxu0 }
 0x295   :  { %v2872_v25 = vpop.f32.mrf.mxu0 }
 0x296   :  { %v2873_v29 = vadd.f32 %v2872_v25, %v2871_v17 }
 0x29e   :  { %v2836_v11 = vpop.f32.mrf.mxu1 }
 0x2a0   :  { %v2837_v16 = vpop.f32.mrf.mxu1 }
 0x2a1   :  { %v2838_v22 = vadd.f32 %v2837_v16, %v2836_v11 }
 0x2a3   :  { %v2052_v2 = vadd.f32 %v2838_v22, %v1982_v26 }
 0x2a5   :  { %v2122_v32 = vadd.f32 %v2873_v29, %v2052_v2 }
 0x2b4   :  { %v2941_v30 = vpop.f32.mrf.mxu0 }
 0x2b6   :  { %v2942_v33 = vpop.f32.mrf.mxu0 }
 0x2b7   :  { %v2943_v36 = vadd.f32 %v2942_v33, %v2941_v30 }
 0x2bf   :  { %v2906_v20 = vpop.f32.mrf.mxu1 }
 0x2c1   :  { %v2907_v27 = vpop.f32.mrf.mxu1 }
 0x2c2   :  { %v2908_v31 = vadd.f32 %v2907_v27, %v2906_v20 }
 0x2c4   :  { %v2192_v34 = vadd.f32 %v2908_v31, %v2122_v32 }
 0x2c6   :  { %v2262_v28 = vadd.f32 %v2943_v36, %v2192_v34 }
 0x2df   :  { %v2976_v35 = vpop.f32.mrf.mxu1 }
 0x2e1   :  { %v2977_v37 = vpop.f32.mrf.mxu1 }
 0x2e2   :  { %v2978_v38 = vadd.f32 %v2977_v37, %v2976_v35 }
 0x2e4   :  { %v2332_v39 = vadd.f32 %v2978_v38, %v2262_v28 }
 0x2e6   :  { %v2336_v40 = vmul.f32 0.01, %v2332_v39  ;;  %vm2335_vm1 = vcmp.gt.f32.partialorder %v2332_v39, 0.0 }
 0x2e8   :  { %v2337_v41 = vsel %vm2335_vm1, %v2332_v39, %v2336_v40 }
 0x2e9   :  { %v2343_v42 = vmul.f32 %v4755_v54, %v2337_v41 }
 0x2eb   :  { %v2345_v43 = vsel %vm2344_vm2, %v2343_v42, 0.0 }
 0x2ec   :  { %2346 = vadd.xlane.f32.xlu0 %v2345_v43 }
 0x2f5   :  { %v2357_v23 = vpop.xlane.xlu1 %2356 }
 0x375   :  { %v2347_v44 = vpop.xlane.xlu0 %2346 }
 0x376   :  { %v2358_v45 = vadd.f32 %v2357_v23, %v2347_v44 }
 0x378   :  { %v2359_v46 = vadd.f32 %v4755_v54, %v2358_v45 }
 0x37a   :  { %v2418_v47 = vmul.f32 -1.442695, %v2359_v46 }
 0x37c   :  { %2987 = vpow2.f32 %v2418_v47 }
 0x389   :  { %v2988_v48 = vpop.eup %2987 }
 0x38a   :  { %v2363_v49 = vadd.f32 1.0, %v2988_v48 }
 0x38c   :  { %2989 = vrcp.f32 %v2363_v49 }
 0x399   :  { %v2990_v50 = vpop.eup %2989 }
 0x39a   :  { %2367 = vrot.lane.b32.xlu1 %v2990_v50, %s2993_s3 }
 0x40c   :  { %v2368_v51 = vpop.permute.xlu1 %2367 }
 0x40d   :  { %2371 = vst.msk [vmem:[%s4901_s4] sm:$0x3] %vm2370_vm3, %v2368_v51 }

</bundles_post_ra>
